<compile_context>
chip_gen: v7x
topology: tpu7x:2x2x1
jax: 0.10.0
libtpu: 0.0.40
codegen_flags: <defaults>
</compile_context>

<pallas_src>
import functools
import math

import jax
import jax.numpy as jnp
from jax import lax
from jax.experimental import pallas as pl
from jax.experimental.pallas import tpu as pltpu


_NEG_BIG = -1e30  # large finite negative (avoids exp(-inf - -inf) NaN risk)


def _gelu_exact(x):
    # matches torch.nn.GELU() default (erf-based, not tanh approximation)
    return 0.5 * x * (1.0 + lax.erf(x * (1.0 / math.sqrt(2.0))))


def _layernorm(x, gamma, beta, eps):
    mu = jnp.mean(x, axis=-1, keepdims=True)
    var = jnp.mean((x - mu) ** 2, axis=-1, keepdims=True)
    return (x - mu) * lax.rsqrt(var + eps) * gamma + beta


def decoder_block_kernel(
    x_ref,                    # (S, D)  full slab of this batch element (f32)
    wq_ref, bq_ref,           # (D, D) bf16, (1, D) f32   (y = x @ W + b)
    wk_ref, bk_ref,
    wv_ref, bv_ref,
    wo_ref, bo_ref,
    ln1_g_ref, ln1_b_ref,     # (1, D) f32
    w1_ref, b1_ref,           # (D, 4D) bf16, (1, 4D) f32
    w2_ref, b2_ref,           # (4D, D) bf16, (1, D) f32
    ln2_g_ref, ln2_b_ref,     # (1, D) f32
    o_ref,                    # (Tq, D)
    k_scr, v_scr,             # (H, S, hd) bf16 scratch, persists across q tiles
    *, n_heads, head_dim, eps, q_tile, seq_len,
):
    H, hd, S, Tq = n_heads, head_dim, seq_len, q_tile
    D = H * hd
    qi = pl.program_id(1)

    # ---- K/V projection for the whole slab, once per batch element --------
    @pl.when(qi == 0)
    def _():
        xb = x_ref[...].astype(jnp.bfloat16)
        k = jnp.dot(xb, wk_ref[...], preferred_element_type=jnp.float32) + bk_ref[...]
        v = jnp.dot(xb, wv_ref[...], preferred_element_type=jnp.float32) + bv_ref[...]
        k_scr[...] = jnp.transpose(k.reshape(S, H, hd), (1, 0, 2)).astype(jnp.bfloat16)
        v_scr[...] = jnp.transpose(v.reshape(S, H, hd), (1, 0, 2)).astype(jnp.bfloat16)

    # ---- query tile --------------------------------------------------------
    start = pl.multiple_of(qi * Tq, Tq)
    x_t = x_ref[pl.ds(start, Tq), :].astype(jnp.float32)       # residual path
    x_b = x_t.astype(jnp.bfloat16)                             # matmul path

    scale = 1.0 / math.sqrt(hd)                                # fold into q
    q = (jnp.dot(x_b, wq_ref[...], preferred_element_type=jnp.float32)
         + bq_ref[...]) * scale
    qh = jnp.transpose(q.reshape(Tq, H, hd), (1, 0, 2)).astype(jnp.bfloat16)

    # ---- batched-head attention (heads as the batch dim of one dot) -------
    s = jnp.einsum("hqe,hke->hqk", qh, k_scr[...],
                   preferred_element_type=jnp.float32)         # (H, Tq, S)

    q_pos = qi * Tq + lax.broadcasted_iota(jnp.int32, (Tq, S), 0)
    k_pos = lax.broadcasted_iota(jnp.int32, (Tq, S), 1)
    causal = (k_pos <= q_pos)[None, :, :]                      # (1, Tq, S)
    s = jnp.where(causal, s, _NEG_BIG)

    m = jnp.max(s, axis=-1, keepdims=True)
    p = jnp.exp(s - m)
    denom = jnp.sum(p, axis=-1, keepdims=True)
    p = p * pl.reciprocal(denom, approx=True)                  # EUP, not VALU div

    ctx = jnp.einsum("hqk,hke->hqe", p.astype(jnp.bfloat16), v_scr[...],
                     preferred_element_type=jnp.float32)       # (H, Tq, hd)
    attn = jnp.transpose(ctx, (1, 0, 2)).reshape(Tq, D)
    attn = (jnp.dot(attn.astype(jnp.bfloat16), wo_ref[...],
                    preferred_element_type=jnp.float32) + bo_ref[...])

    # ---- residual + LayerNorm 1 -------------------------------------------
    a1 = _layernorm(x_t + attn, ln1_g_ref[...], ln1_b_ref[...], eps)

    # ---- FFN: Linear -> GELU -> Linear --------------------------------------
    h = (jnp.dot(a1.astype(jnp.bfloat16), w1_ref[...],
                 preferred_element_type=jnp.float32) + b1_ref[...])
    h = _gelu_exact(h)
    a2 = (jnp.dot(h.astype(jnp.bfloat16), w2_ref[...],
                  preferred_element_type=jnp.float32) + b2_ref[...])

    # ---- residual + LayerNorm 2 -------------------------------------------
    out = _layernorm(a1 + a2, ln2_g_ref[...], ln2_b_ref[...], eps)
    o_ref[...] = out.astype(o_ref.dtype)


def decoder_block(x_sbd, params, *, n_heads):
    """x_sbd: (seq, batch, dim) float32, matching the PyTorch module."""
    S, B, D = x_sbd.shape
    head_dim = D // n_heads
    q_tile = S if S <= 128 else 128
    assert S % q_tile == 0, "seq length must be a multiple of the q tile"
    x_bsd = jnp.transpose(x_sbd, (1, 0, 2))                    # (B, S, D)

    bf = jnp.bfloat16
    w_args = (
        params["wq"].astype(bf), params["bq"],
        params["wk"].astype(bf), params["bk"],
        params["wv"].astype(bf), params["bv"],
        params["wo"].astype(bf), params["bo"],
        params["ln1_g"], params["ln1_b"],
        params["w1"].astype(bf), params["b1"],
        params["w2"].astype(bf), params["b2"],
        params["ln2_g"], params["ln2_b"],
    )

    def full_spec(a):
        shape = a.shape
        return pl.BlockSpec(shape, lambda b, qi, _s=shape: (0,) * len(_s))

    weight_specs = [full_spec(a) for a in w_args]

    kernel = functools.partial(
        decoder_block_kernel, n_heads=n_heads, head_dim=head_dim,
        eps=1e-5, q_tile=q_tile, seq_len=S,
    )

    out_bsd = pl.pallas_call(
        kernel,
        out_shape=jax.ShapeDtypeStruct((B, S, D), x_sbd.dtype),
        grid_spec=pltpu.PrefetchScalarGridSpec(
            num_scalar_prefetch=0,
            grid=(B, S // q_tile),
            in_specs=[pl.BlockSpec((None, S, D), lambda b, qi: (b, 0, 0))]
                     + weight_specs,
            out_specs=pl.BlockSpec((None, q_tile, D), lambda b, qi: (b, qi, 0)),
            scratch_shapes=[
                pltpu.VMEM((n_heads, S, head_dim), jnp.bfloat16),   # K (head-major)
                pltpu.VMEM((n_heads, S, head_dim), jnp.bfloat16),   # V (head-major)
            ],
        ),
        compiler_params=pltpu.CompilerParams(
            dimension_semantics=("parallel", "arbitrary"),
            vmem_limit_bytes=64 * 1024 * 1024,
        ),
    )(x_bsd, *w_args)
    return jnp.transpose(out_bsd, (1, 0, 2))                   # back to (S, B, D)


def init_params(key, dim_model, n_heads):
    """Deterministic synthetic parameters (f32, stored transposed: y = x@W+b)."""
    D = dim_model
    ks = jax.random.split(key, 8)
    s = 0.05
    return {
        "wq": s * jax.random.normal(ks[0], (D, D), jnp.float32),
        "wk": s * jax.random.normal(ks[1], (D, D), jnp.float32),
        "wv": s * jax.random.normal(ks[2], (D, D), jnp.float32),
        "wo": s * jax.random.normal(ks[3], (D, D), jnp.float32),
        "bq": s * jax.random.normal(ks[4], (1, D), jnp.float32),
        "bk": jnp.zeros((1, D), jnp.float32),
        "bv": s * jax.random.normal(ks[5], (1, D), jnp.float32),
        "bo": jnp.zeros((1, D), jnp.float32),
        "ln1_g": jnp.ones((1, D), jnp.float32),
        "ln1_b": jnp.zeros((1, D), jnp.float32),
        "w1": s * jax.random.normal(ks[6], (D, 4 * D), jnp.float32),
        "b1": jnp.zeros((1, 4 * D), jnp.float32),
        "w2": s * jax.random.normal(ks[7], (4 * D, D), jnp.float32),
        "b2": jnp.zeros((1, D), jnp.float32),
        "ln2_g": jnp.ones((1, D), jnp.float32),
        "ln2_b": jnp.zeros((1, D), jnp.float32),
    }


def decoder_block_reference(x_sbd, params, *, n_heads):
    """Pure-JAX f32 reference mirroring the PyTorch forward (for validation)."""
    S, B, D = x_sbd.shape
    hd = D // n_heads
    x = jnp.transpose(x_sbd, (1, 0, 2))                        # (B, S, D)
    q = x @ params["wq"] + params["bq"]
    k = x @ params["wk"] + params["bk"]
    v = x @ params["wv"] + params["bv"]
    q = q.reshape(B, S, n_heads, hd).transpose(0, 2, 1, 3)
    k = k.reshape(B, S, n_heads, hd).transpose(0, 2, 1, 3)
    v = v.reshape(B, S, n_heads, hd).transpose(0, 2, 1, 3)
    scores = jnp.einsum("bhqd,bhkd->bhqk", q, k) / math.sqrt(hd)
    mask = jnp.tril(jnp.ones((S, S), bool))
    scores = jnp.where(mask, scores, -jnp.inf)
    p = jax.nn.softmax(scores, axis=-1)
    attn = jnp.einsum("bhqk,bhkd->bhqd", p, v).transpose(0, 2, 1, 3).reshape(B, S, D)
    attn = attn @ params["wo"] + params["bo"]

    def ln(h, g, b):
        mu = jnp.mean(h, -1, keepdims=True)
        var = jnp.mean((h - mu) ** 2, -1, keepdims=True)
        return (h - mu) / jnp.sqrt(var + 1e-5) * g + b

    a1 = ln(x + attn, params["ln1_g"], params["ln1_b"])
    h = jax.nn.gelu(a1 @ params["w1"] + params["b1"], approximate=False)
    a2 = h @ params["w2"] + params["b2"]
    out = ln(a1 + a2, params["ln2_g"], params["ln2_b"])
    return jnp.transpose(out, (1, 0, 2))


if __name__ == "__main__":
    # small shapes consistent with the module's forward: x is (seq, batch, dim)
    seq, batch, dim_model, n_heads = 8, 2, 32, 4

    key = jax.random.PRNGKey(0)
    kx, kp = jax.random.split(key)
    x = jax.random.normal(kx, (seq, batch, dim_model), jnp.float32)
    params = init_params(kp, dim_model, n_heads)

    out = jax.block_until_ready(decoder_block(x, params, n_heads=n_heads))
    ref = jax.block_until_ready(decoder_block_reference(x, params, n_heads=n_heads))

    assert out.shape == (seq, batch, dim_model)
    max_err = float(jnp.max(jnp.abs(out - ref)))
    # bf16 matmul inputs with f32 accumulation -> small drift vs f32 reference
    assert bool(jnp.allclose(out, ref, atol=5e-2, rtol=5e-2)), max_err

    print("KERNEL_OK")
</pallas_src>

<mosaic_0001>
module attributes {stable_mosaic.version = 11 : i64} {
  func.func @decoder_block_kernel(%arg0: i32, %arg1: i32, %arg2: memref<1x8x32xf32, #tpu.memory_space<vmem>>, %arg3: memref<32x32xbf16, #tpu.memory_space<vmem>>, %arg4: memref<1x32xf32, #tpu.memory_space<vmem>>, %arg5: memref<32x32xbf16, #tpu.memory_space<vmem>>, %arg6: memref<1x32xf32, #tpu.memory_space<vmem>>, %arg7: memref<32x32xbf16, #tpu.memory_space<vmem>>, %arg8: memref<1x32xf32, #tpu.memory_space<vmem>>, %arg9: memref<32x32xbf16, #tpu.memory_space<vmem>>, %arg10: memref<1x32xf32, #tpu.memory_space<vmem>>, %arg11: memref<1x32xf32, #tpu.memory_space<vmem>>, %arg12: memref<1x32xf32, #tpu.memory_space<vmem>>, %arg13: memref<32x128xbf16, #tpu.memory_space<vmem>>, %arg14: memref<1x128xf32, #tpu.memory_space<vmem>>, %arg15: memref<128x32xbf16, #tpu.memory_space<vmem>>, %arg16: memref<1x32xf32, #tpu.memory_space<vmem>>, %arg17: memref<1x32xf32, #tpu.memory_space<vmem>>, %arg18: memref<1x32xf32, #tpu.memory_space<vmem>>, %arg19: memref<1x8x32xf32, #tpu.memory_space<vmem>>, %arg20: memref<4x8x8xbf16, #tpu.memory_space<vmem>>, %arg21: memref<4x8x8xbf16, #tpu.memory_space<vmem>>) attributes {dimension_semantics = [#tpu.dimension_semantics<parallel>, #tpu.dimension_semantics<arbitrary>], iteration_bounds = array<i64: 2, 1>, scalar_prefetch = 0 : i64, scratch_operands = 2 : i64, tpu.core_type = #tpu.core_type<tc>, window_params = [{transform_indices = @transform_0, window_bounds = array<i64: 1, 8, 32>}, {pipeline_mode = #tpu.pipeline_mode<synchronous>, transform_indices = @transform_1, window_bounds = array<i64: 32, 32>}, {pipeline_mode = #tpu.pipeline_mode<synchronous>, transform_indices = @transform_2, window_bounds = array<i64: 1, 32>}, {pipeline_mode = #tpu.pipeline_mode<synchronous>, transform_indices = @transform_3, window_bounds = array<i64: 32, 32>}, {pipeline_mode = #tpu.pipeline_mode<synchronous>, transform_indices = @transform_4, window_bounds = array<i64: 1, 32>}, {pipeline_mode = #tpu.pipeline_mode<synchronous>, transform_indices = @transform_5, window_bounds = array<i64: 32, 32>}, {pipeline_mode = #tpu.pipeline_mode<synchronous>, transform_indices = @transform_6, window_bounds = array<i64: 1, 32>}, {pipeline_mode = #tpu.pipeline_mode<synchronous>, transform_indices = @transform_7, window_bounds = array<i64: 32, 32>}, {pipeline_mode = #tpu.pipeline_mode<synchronous>, transform_indices = @transform_8, window_bounds = array<i64: 1, 32>}, {pipeline_mode = #tpu.pipeline_mode<synchronous>, transform_indices = @transform_9, window_bounds = array<i64: 1, 32>}, {pipeline_mode = #tpu.pipeline_mode<synchronous>, transform_indices = @transform_10, window_bounds = array<i64: 1, 32>}, {pipeline_mode = #tpu.pipeline_mode<synchronous>, transform_indices = @transform_11, window_bounds = array<i64: 32, 128>}, {pipeline_mode = #tpu.pipeline_mode<synchronous>, transform_indices = @transform_12, window_bounds = array<i64: 1, 128>}, {pipeline_mode = #tpu.pipeline_mode<synchronous>, transform_indices = @transform_13, window_bounds = array<i64: 128, 32>}, {pipeline_mode = #tpu.pipeline_mode<synchronous>, transform_indices = @transform_14, window_bounds = array<i64: 1, 32>}, {pipeline_mode = #tpu.pipeline_mode<synchronous>, transform_indices = @transform_15, window_bounds = array<i64: 1, 32>}, {pipeline_mode = #tpu.pipeline_mode<synchronous>, transform_indices = @transform_16, window_bounds = array<i64: 1, 32>}, {transform_indices = @transform_17, window_bounds = array<i64: 1, 8, 32>}]} {
    %c0_i32 = arith.constant 0 : i32
    %0 = arith.cmpi eq, %arg1, %c0_i32 : i32
    %1 = arith.extui %0 : i1 to i32
    %c0_i32_0 = arith.constant 0 : i32
    %2 = arith.cmpi ne, %1, %c0_i32_0 : i32
    scf.if %2 {
      %c0_58 = arith.constant 0 : index
      %c0_59 = arith.constant 0 : index
      %c0_60 = arith.constant 0 : index
      %126 = vector.load %arg2[%c0_58, %c0_59, %c0_60] : memref<1x8x32xf32, #tpu.memory_space<vmem>>, vector<1x8x32xf32>
      %127 = vector.shape_cast %126 : vector<1x8x32xf32> to vector<8x32xf32>
      %128 = arith.truncf %127 : vector<8x32xf32> to vector<8x32xbf16>
      %c0_61 = arith.constant 0 : index
      %c0_62 = arith.constant 0 : index
      %129 = vector.load %arg5[%c0_61, %c0_62] : memref<32x32xbf16, #tpu.memory_space<vmem>>, vector<32x32xbf16>
      %cst_63 = arith.constant dense<0.000000e+00> : vector<8x32xf32>
      %130 = tpu.matmul %128, %129, %cst_63 {dimension_numbers = #tpu.dot_dimension_numbers<[1], [0], [0], [1], [0, 0, 1, 1], [], []>} : vector<8x32xbf16>, vector<32x32xbf16>, vector<8x32xf32> -> vector<8x32xf32>
      %c0_64 = arith.constant 0 : index
      %c0_65 = arith.constant 0 : index
      %131 = vector.load %arg6[%c0_64, %c0_65] : memref<1x32xf32, #tpu.memory_space<vmem>>, vector<1x32xf32>
      %132 = vector.broadcast %131 : vector<1x32xf32> to vector<8x32xf32>
      %133 = arith.addf %130, %132 : vector<8x32xf32>
      %c0_66 = arith.constant 0 : index
      %c0_67 = arith.constant 0 : index
      %134 = vector.load %arg7[%c0_66, %c0_67] : memref<32x32xbf16, #tpu.memory_space<vmem>>, vector<32x32xbf16>
      %cst_68 = arith.constant dense<0.000000e+00> : vector<8x32xf32>
      %135 = tpu.matmul %128, %134, %cst_68 {dimension_numbers = #tpu.dot_dimension_numbers<[1], [0], [0], [1], [0, 0, 1, 1], [], []>} : vector<8x32xbf16>, vector<32x32xbf16>, vector<8x32xf32> -> vector<8x32xf32>
      %c0_69 = arith.constant 0 : index
      %c0_70 = arith.constant 0 : index
      %136 = vector.load %arg8[%c0_69, %c0_70] : memref<1x32xf32, #tpu.memory_space<vmem>>, vector<1x32xf32>
      %137 = vector.broadcast %136 : vector<1x32xf32> to vector<8x32xf32>
      %138 = arith.addf %135, %137 : vector<8x32xf32>
      %139 = vector.shape_cast %133 : vector<8x32xf32> to vector<8x4x8xf32>
      %140 = tpu.transpose %139, [1, 0, 2] : vector<8x4x8xf32> -> vector<4x8x8xf32>
      %141 = arith.truncf %140 : vector<4x8x8xf32> to vector<4x8x8xbf16>
      %c0_71 = arith.constant 0 : index
      %c0_72 = arith.constant 0 : index
      %c0_73 = arith.constant 0 : index
      %142 = vector.load %arg20[%c0_71, %c0_72, %c0_73] : memref<4x8x8xbf16, #tpu.memory_space<vmem>>, vector<4x8x8xbf16>
      tpu.vector_store %arg20[%c0_71, %c0_72, %c0_73], %141 {strides = array<i32>} : memref<4x8x8xbf16, #tpu.memory_space<vmem>>, vector<4x8x8xbf16>,
      %143 = vector.shape_cast %138 : vector<8x32xf32> to vector<8x4x8xf32>
      %144 = tpu.transpose %143, [1, 0, 2] : vector<8x4x8xf32> -> vector<4x8x8xf32>
      %145 = arith.truncf %144 : vector<4x8x8xf32> to vector<4x8x8xbf16>
      %c0_74 = arith.constant 0 : index
      %c0_75 = arith.constant 0 : index
      %c0_76 = arith.constant 0 : index
      %146 = vector.load %arg21[%c0_74, %c0_75, %c0_76] : memref<4x8x8xbf16, #tpu.memory_space<vmem>>, vector<4x8x8xbf16>
      tpu.vector_store %arg21[%c0_74, %c0_75, %c0_76], %145 {strides = array<i32>} : memref<4x8x8xbf16, #tpu.memory_space<vmem>>, vector<4x8x8xbf16>,
    } else {
    }
    %c8_i32 = arith.constant 8 : i32
    %3 = arith.muli %arg1, %c8_i32 : i32
    %4 = tpu.assume_multiple %3, 8 : i32
    %c0 = arith.constant 0 : index
    %5 = arith.index_cast %4 : i32 to index
    %c0_1 = arith.constant 0 : index
    %6 = vector.load %arg2[%c0, %5, %c0_1] : memref<1x8x32xf32, #tpu.memory_space<vmem>>, vector<1x8x32xf32>
    %7 = vector.shape_cast %6 : vector<1x8x32xf32> to vector<8x32xf32>
    %8 = arith.truncf %7 : vector<8x32xf32> to vector<8x32xbf16>
    %c0_2 = arith.constant 0 : index
    %c0_3 = arith.constant 0 : index
    %9 = vector.load %arg3[%c0_2, %c0_3] : memref<32x32xbf16, #tpu.memory_space<vmem>>, vector<32x32xbf16>
    %cst = arith.constant dense<0.000000e+00> : vector<8x32xf32>
    %10 = tpu.matmul %8, %9, %cst {dimension_numbers = #tpu.dot_dimension_numbers<[1], [0], [0], [1], [0, 0, 1, 1], [], []>} : vector<8x32xbf16>, vector<32x32xbf16>, vector<8x32xf32> -> vector<8x32xf32>
    %c0_4 = arith.constant 0 : index
    %c0_5 = arith.constant 0 : index
    %11 = vector.load %arg4[%c0_4, %c0_5] : memref<1x32xf32, #tpu.memory_space<vmem>>, vector<1x32xf32>
    %12 = vector.broadcast %11 : vector<1x32xf32> to vector<8x32xf32>
    %13 = arith.addf %10, %12 : vector<8x32xf32>
    %cst_6 = arith.constant 0.353553385 : f32
    %14 = vector.broadcast %cst_6 : f32 to vector<8x32xf32>
    %15 = arith.mulf %13, %14 : vector<8x32xf32>
    %16 = vector.shape_cast %15 : vector<8x32xf32> to vector<8x4x8xf32>
    %17 = tpu.transpose %16, [1, 0, 2] : vector<8x4x8xf32> -> vector<4x8x8xf32>
    %18 = arith.truncf %17 : vector<4x8x8xf32> to vector<4x8x8xbf16>
    %c0_7 = arith.constant 0 : index
    %c0_8 = arith.constant 0 : index
    %c0_9 = arith.constant 0 : index
    %19 = vector.load %arg20[%c0_7, %c0_8, %c0_9] : memref<4x8x8xbf16, #tpu.memory_space<vmem>>, vector<4x8x8xbf16>
    "tpu.trace_start"() <{level = 10 : i32, message = "hqe,hke->hqk"}> : () -> ()
    %cst_10 = arith.constant dense<0.000000e+00> : vector<4x8x8xf32>
    %20 = tpu.matmul %18, %19, %cst_10 {dimension_numbers = #tpu.dot_dimension_numbers<[2], [2], [1], [1], [0, 0, 0, 1, 1, 1], [0], [0]>} : vector<4x8x8xbf16>, vector<4x8x8xbf16>, vector<4x8x8xf32> -> vector<4x8x8xf32>
    "tpu.trace_stop"() : () -> ()
    %c8_i32_11 = arith.constant 8 : i32
    %21 = arith.muli %arg1, %c8_i32_11 : i32
    %22 = tpu.iota {dimensions = array<i32: 0>} : vector<8x8xi32>
    %23 = vector.broadcast %21 : i32 to vector<8x8xi32>
    %24 = arith.addi %23, %22 : vector<8x8xi32>
    %25 = tpu.iota {dimensions = array<i32: 1>} : vector<8x8xi32>
    %26 = arith.cmpi sle, %25, %24 : vector<8x8xi32>
    %27 = vector.shape_cast %26 : vector<8x8xi1> to vector<1x8x8xi1>
    %cst_12 = arith.constant -1.000000e+30 : f32
    %28 = vector.shape_cast %27 : vector<1x8x8xi1> to vector<1x8x8xi1>
    %29 = vector.broadcast %28 : vector<1x8x8xi1> to vector<4x8x8xi1>
    %30 = vector.broadcast %cst_12 : f32 to vector<4x8x8xf32>
    %31 = arith.select %29, %20, %30 : vector<4x8x8xi1>, vector<4x8x8xf32>
    %cst_13 = arith.constant dense<0xFF800000> : vector<4x8xf32>
    %32 = vector.multi_reduction <maximumf>, %31, %cst_13 [2] : vector<4x8x8xf32> to vector<4x8xf32>
    %33 = vector.shape_cast %32 : vector<4x8xf32> to vector<4x8x1xf32>
    %34 = vector.broadcast %33 : vector<4x8x1xf32> to vector<4x8x8xf32>
    %35 = arith.subf %31, %34 : vector<4x8x8xf32>
    %36 = math.exp %35 : vector<4x8x8xf32>
    %cst_14 = arith.constant dense<0.000000e+00> : vector<4x8xf32>
    %37 = vector.multi_reduction <add>, %36, %cst_14 [2] : vector<4x8x8xf32> to vector<4x8xf32>
    %38 = vector.shape_cast %37 : vector<4x8xf32> to vector<4x8x1xf32>
    %39 = tpu.reciprocal %38 {approx = true} : vector<4x8x1xf32> -> vector<4x8x1xf32>
    %40 = vector.broadcast %39 : vector<4x8x1xf32> to vector<4x8x8xf32>
    %41 = arith.mulf %36, %40 : vector<4x8x8xf32>
    %42 = arith.truncf %41 : vector<4x8x8xf32> to vector<4x8x8xbf16>
    %c0_15 = arith.constant 0 : index
    %c0_16 = arith.constant 0 : index
    %c0_17 = arith.constant 0 : index
    %43 = vector.load %arg21[%c0_15, %c0_16, %c0_17] : memref<4x8x8xbf16, #tpu.memory_space<vmem>>, vector<4x8x8xbf16>
    "tpu.trace_start"() <{level = 10 : i32, message = "hqk,hke->hqe"}> : () -> ()
    %cst_18 = arith.constant dense<0.000000e+00> : vector<4x8x8xf32>
    %44 = tpu.matmul %42, %43, %cst_18 {dimension_numbers = #tpu.dot_dimension_numbers<[2], [1], [1], [2], [0, 0, 0, 1, 1, 2], [0], [0]>} : vector<4x8x8xbf16>, vector<4x8x8xbf16>, vector<4x8x8xf32> -> vector<4x8x8xf32>
    "tpu.trace_stop"() : () -> ()
    %45 = tpu.transpose %44, [1, 0, 2] : vector<4x8x8xf32> -> vector<8x4x8xf32>
    %46 = vector.shape_cast %45 : vector<8x4x8xf32> to vector<8x32xf32>
    %47 = arith.truncf %46 : vector<8x32xf32> to vector<8x32xbf16>
    %c0_19 = arith.constant 0 : index
    %c0_20 = arith.constant 0 : index
    %48 = vector.load %arg9[%c0_19, %c0_20] : memref<32x32xbf16, #tpu.memory_space<vmem>>, vector<32x32xbf16>
    %cst_21 = arith.constant dense<0.000000e+00> : vector<8x32xf32>
    %49 = tpu.matmul %47, %48, %cst_21 {dimension_numbers = #tpu.dot_dimension_numbers<[1], [0], [0], [1], [0, 0, 1, 1], [], []>} : vector<8x32xbf16>, vector<32x32xbf16>, vector<8x32xf32> -> vector<8x32xf32>
    %c0_22 = arith.constant 0 : index
    %c0_23 = arith.constant 0 : index
    %50 = vector.load %arg10[%c0_22, %c0_23] : memref<1x32xf32, #tpu.memory_space<vmem>>, vector<1x32xf32>
    %51 = vector.broadcast %50 : vector<1x32xf32> to vector<8x32xf32>
    %52 = arith.addf %49, %51 : vector<8x32xf32>
    %53 = arith.addf %7, %52 : vector<8x32xf32>
    %c0_24 = arith.constant 0 : index
    %c0_25 = arith.constant 0 : index
    %54 = vector.load %arg11[%c0_24, %c0_25] : memref<1x32xf32, #tpu.memory_space<vmem>>, vector<1x32xf32>
    %c0_26 = arith.constant 0 : index
    %c0_27 = arith.constant 0 : index
    %55 = vector.load %arg12[%c0_26, %c0_27] : memref<1x32xf32, #tpu.memory_space<vmem>>, vector<1x32xf32>
    %cst_28 = arith.constant dense<0.000000e+00> : vector<8xf32>
    %56 = vector.multi_reduction <add>, %53, %cst_28 [1] : vector<8x32xf32> to vector<8xf32>
    %57 = vector.shape_cast %56 : vector<8xf32> to vector<8x1xf32>
    %cst_29 = arith.constant 3.200000e+01 : f32
    %58 = vector.broadcast %cst_29 : f32 to vector<8x1xf32>
    %59 = arith.divf %57, %58 : vector<8x1xf32>
    %60 = vector.broadcast %59 : vector<8x1xf32> to vector<8x32xf32>
    %61 = arith.subf %53, %60 : vector<8x32xf32>
    %62 = arith.mulf %61, %61 : vector<8x32xf32>
    %cst_30 = arith.constant dense<0.000000e+00> : vector<8xf32>
    %63 = vector.multi_reduction <add>, %62, %cst_30 [1] : vector<8x32xf32> to vector<8xf32>
    %64 = vector.shape_cast %63 : vector<8xf32> to vector<8x1xf32>
    %cst_31 = arith.constant 3.200000e+01 : f32
    %65 = vector.broadcast %cst_31 : f32 to vector<8x1xf32>
    %66 = arith.divf %64, %65 : vector<8x1xf32>
    %67 = vector.broadcast %59 : vector<8x1xf32> to vector<8x32xf32>
    %68 = arith.subf %53, %67 : vector<8x32xf32>
    %cst_32 = arith.constant 9.99999974E-6 : f32
    %69 = vector.broadcast %cst_32 : f32 to vector<8x1xf32>
    %70 = arith.addf %66, %69 : vector<8x1xf32>
    %71 = math.rsqrt %70 : vector<8x1xf32>
    %72 = vector.broadcast %71 : vector<8x1xf32> to vector<8x32xf32>
    %73 = arith.mulf %68, %72 : vector<8x32xf32>
    %74 = vector.broadcast %54 : vector<1x32xf32> to vector<8x32xf32>
    %75 = arith.mulf %73, %74 : vector<8x32xf32>
    %76 = vector.broadcast %55 : vector<1x32xf32> to vector<8x32xf32>
    %77 = arith.addf %75, %76 : vector<8x32xf32>
    %78 = arith.truncf %77 : vector<8x32xf32> to vector<8x32xbf16>
    %c0_33 = arith.constant 0 : index
    %c0_34 = arith.constant 0 : index
    %79 = vector.load %arg13[%c0_33, %c0_34] : memref<32x128xbf16, #tpu.memory_space<vmem>>, vector<32x128xbf16>
    %cst_35 = arith.constant dense<0.000000e+00> : vector<8x128xf32>
    %80 = tpu.matmul %78, %79, %cst_35 {dimension_numbers = #tpu.dot_dimension_numbers<[1], [0], [0], [1], [0, 0, 1, 1], [], []>} : vector<8x32xbf16>, vector<32x128xbf16>, vector<8x128xf32> -> vector<8x128xf32>
    %c0_36 = arith.constant 0 : index
    %c0_37 = arith.constant 0 : index
    %81 = vector.load %arg14[%c0_36, %c0_37] : memref<1x128xf32, #tpu.memory_space<vmem>>, vector<1x128xf32>
    %82 = vector.broadcast %81 : vector<1x128xf32> to vector<8x128xf32>
    %83 = arith.addf %80, %82 : vector<8x128xf32>
    %cst_38 = arith.constant 5.000000e-01 : f32
    %84 = vector.broadcast %cst_38 : f32 to vector<8x128xf32>
    %85 = arith.mulf %84, %83 : vector<8x128xf32>
    %cst_39 = arith.constant 0.707106769 : f32
    %86 = vector.broadcast %cst_39 : f32 to vector<8x128xf32>
    %87 = arith.mulf %83, %86 : vector<8x128xf32>
    %88 = math.erf %87 : vector<8x128xf32>
    %cst_40 = arith.constant 1.000000e+00 : f32
    %89 = vector.broadcast %cst_40 : f32 to vector<8x128xf32>
    %90 = arith.addf %89, %88 : vector<8x128xf32>
    %91 = arith.mulf %85, %90 : vector<8x128xf32>
    %92 = arith.truncf %91 : vector<8x128xf32> to vector<8x128xbf16>
    %c0_41 = arith.constant 0 : index
    %c0_42 = arith.constant 0 : index
    %93 = vector.load %arg15[%c0_41, %c0_42] : memref<128x32xbf16, #tpu.memory_space<vmem>>, vector<128x32xbf16>
    %cst_43 = arith.constant dense<0.000000e+00> : vector<8x32xf32>
    %94 = tpu.matmul %92, %93, %cst_43 {dimension_numbers = #tpu.dot_dimension_numbers<[1], [0], [0], [1], [0, 0, 1, 1], [], []>} : vector<8x128xbf16>, vector<128x32xbf16>, vector<8x32xf32> -> vector<8x32xf32>
    %c0_44 = arith.constant 0 : index
    %c0_45 = arith.constant 0 : index
    %95 = vector.load %arg16[%c0_44, %c0_45] : memref<1x32xf32, #tpu.memory_space<vmem>>, vector<1x32xf32>
    %96 = vector.broadcast %95 : vector<1x32xf32> to vector<8x32xf32>
    %97 = arith.addf %94, %96 : vector<8x32xf32>
    %98 = arith.addf %77, %97 : vector<8x32xf32>
    %c0_46 = arith.constant 0 : index
    %c0_47 = arith.constant 0 : index
    %99 = vector.load %arg17[%c0_46, %c0_47] : memref<1x32xf32, #tpu.memory_space<vmem>>, vector<1x32xf32>
    %c0_48 = arith.constant 0 : index
    %c0_49 = arith.constant 0 : index
    %100 = vector.load %arg18[%c0_48, %c0_49] : memref<1x32xf32, #tpu.memory_space<vmem>>, vector<1x32xf32>
    %cst_50 = arith.constant dense<0.000000e+00> : vector<8xf32>
    %101 = vector.multi_reduction <add>, %98, %cst_50 [1] : vector<8x32xf32> to vector<8xf32>
    %102 = vector.shape_cast %101 : vector<8xf32> to vector<8x1xf32>
    %cst_51 = arith.constant 3.200000e+01 : f32
    %103 = vector.broadcast %cst_51 : f32 to vector<8x1xf32>
    %104 = arith.divf %102, %103 : vector<8x1xf32>
    %105 = vector.broadcast %104 : vector<8x1xf32> to vector<8x32xf32>
    %106 = arith.subf %98, %105 : vector<8x32xf32>
    %107 = arith.mulf %106, %106 : vector<8x32xf32>
    %cst_52 = arith.constant dense<0.000000e+00> : vector<8xf32>
    %108 = vector.multi_reduction <add>, %107, %cst_52 [1] : vector<8x32xf32> to vector<8xf32>
    %109 = vector.shape_cast %108 : vector<8xf32> to vector<8x1xf32>
    %cst_53 = arith.constant 3.200000e+01 : f32
    %110 = vector.broadcast %cst_53 : f32 to vector<8x1xf32>
    %111 = arith.divf %109, %110 : vector<8x1xf32>
    %112 = vector.broadcast %104 : vector<8x1xf32> to vector<8x32xf32>
    %113 = arith.subf %98, %112 : vector<8x32xf32>
    %cst_54 = arith.constant 9.99999974E-6 : f32
    %114 = vector.broadcast %cst_54 : f32 to vector<8x1xf32>
    %115 = arith.addf %111, %114 : vector<8x1xf32>
    %116 = math.rsqrt %115 : vector<8x1xf32>
    %117 = vector.broadcast %116 : vector<8x1xf32> to vector<8x32xf32>
    %118 = arith.mulf %113, %117 : vector<8x32xf32>
    %119 = vector.broadcast %99 : vector<1x32xf32> to vector<8x32xf32>
    %120 = arith.mulf %118, %119 : vector<8x32xf32>
    %121 = vector.broadcast %100 : vector<1x32xf32> to vector<8x32xf32>
    %122 = arith.addf %120, %121 : vector<8x32xf32>
    %c0_55 = arith.constant 0 : index
    %c0_56 = arith.constant 0 : index
    %c0_57 = arith.constant 0 : index
    %123 = vector.load %arg19[%c0_55, %c0_56, %c0_57] : memref<1x8x32xf32, #tpu.memory_space<vmem>>, vector<1x8x32xf32>
    %124 = vector.shape_cast %123 : vector<1x8x32xf32> to vector<8x32xf32>
    %125 = vector.shape_cast %122 : vector<8x32xf32> to vector<1x8x32xf32>
    tpu.vector_store %arg19[%c0_55, %c0_56, %c0_57], %125 {strides = array<i32>} : memref<1x8x32xf32, #tpu.memory_space<vmem>>, vector<1x8x32xf32>,
    return
  }
  func.func @transform_0(%arg0: i32, %arg1: i32) -> (i32, i32, i32) {
    %c0_i32 = arith.constant 0 : i32
    %c0_i32_0 = arith.constant 0 : i32
    %c0_i32_1 = arith.constant 0 : i32
    return %arg0, %c0_i32, %c0_i32_0 : i32, i32, i32
  }
  func.func @transform_1(%arg0: i32, %arg1: i32) -> (i32, i32) {
    %c0_i32 = arith.constant 0 : i32
    %c0_i32_0 = arith.constant 0 : i32
    %c0_i32_1 = arith.constant 0 : i32
    return %c0_i32, %c0_i32_0 : i32, i32
  }
  func.func @transform_2(%arg0: i32, %arg1: i32) -> (i32, i32) {
    %c0_i32 = arith.constant 0 : i32
    %c0_i32_0 = arith.constant 0 : i32
    %c0_i32_1 = arith.constant 0 : i32
    return %c0_i32, %c0_i32_0 : i32, i32
  }
  func.func @transform_3(%arg0: i32, %arg1: i32) -> (i32, i32) {
    %c0_i32 = arith.constant 0 : i32
    %c0_i32_0 = arith.constant 0 : i32
    %c0_i32_1 = arith.constant 0 : i32
    return %c0_i32, %c0_i32_0 : i32, i32
  }
  func.func @transform_4(%arg0: i32, %arg1: i32) -> (i32, i32) {
    %c0_i32 = arith.constant 0 : i32
    %c0_i32_0 = arith.constant 0 : i32
    %c0_i32_1 = arith.constant 0 : i32
    return %c0_i32, %c0_i32_0 : i32, i32
  }
  func.func @transform_5(%arg0: i32, %arg1: i32) -> (i32, i32) {
    %c0_i32 = arith.constant 0 : i32
    %c0_i32_0 = arith.constant 0 : i32
    %c0_i32_1 = arith.constant 0 : i32
    return %c0_i32, %c0_i32_0 : i32, i32
  }
  func.func @transform_6(%arg0: i32, %arg1: i32) -> (i32, i32) {
    %c0_i32 = arith.constant 0 : i32
    %c0_i32_0 = arith.constant 0 : i32
    %c0_i32_1 = arith.constant 0 : i32
    return %c0_i32, %c0_i32_0 : i32, i32
  }
  func.func @transform_7(%arg0: i32, %arg1: i32) -> (i32, i32) {
    %c0_i32 = arith.constant 0 : i32
    %c0_i32_0 = arith.constant 0 : i32
    %c0_i32_1 = arith.constant 0 : i32
    return %c0_i32, %c0_i32_0 : i32, i32
  }
  func.func @transform_8(%arg0: i32, %arg1: i32) -> (i32, i32) {
    %c0_i32 = arith.constant 0 : i32
    %c0_i32_0 = arith.constant 0 : i32
    %c0_i32_1 = arith.constant 0 : i32
    return %c0_i32, %c0_i32_0 : i32, i32
  }
  func.func @transform_9(%arg0: i32, %arg1: i32) -> (i32, i32) {
    %c0_i32 = arith.constant 0 : i32
    %c0_i32_0 = arith.constant 0 : i32
    %c0_i32_1 = arith.constant 0 : i32
    return %c0_i32, %c0_i32_0 : i32, i32
  }
  func.func @transform_10(%arg0: i32, %arg1: i32) -> (i32, i32) {
    %c0_i32 = arith.constant 0 : i32
    %c0_i32_0 = arith.constant 0 : i32
    %c0_i32_1 = arith.constant 0 : i32
    return %c0_i32, %c0_i32_0 : i32, i32
  }
  func.func @transform_11(%arg0: i32, %arg1: i32) -> (i32, i32) {
    %c0_i32 = arith.constant 0 : i32
    %c0_i32_0 = arith.constant 0 : i32
    %c0_i32_1 = arith.constant 0 : i32
    return %c0_i32, %c0_i32_0 : i32, i32
  }
  func.func @transform_12(%arg0: i32, %arg1: i32) -> (i32, i32) {
    %c0_i32 = arith.constant 0 : i32
    %c0_i32_0 = arith.constant 0 : i32
    %c0_i32_1 = arith.constant 0 : i32
    return %c0_i32, %c0_i32_0 : i32, i32
  }
  func.func @transform_13(%arg0: i32, %arg1: i32) -> (i32, i32) {
    %c0_i32 = arith.constant 0 : i32
    %c0_i32_0 = arith.constant 0 : i32
    %c0_i32_1 = arith.constant 0 : i32
    return %c0_i32, %c0_i32_0 : i32, i32
  }
  func.func @transform_14(%arg0: i32, %arg1: i32) -> (i32, i32) {
    %c0_i32 = arith.constant 0 : i32
    %c0_i32_0 = arith.constant 0 : i32
    %c0_i32_1 = arith.constant 0 : i32
    return %c0_i32, %c0_i32_0 : i32, i32
  }
  func.func @transform_15(%arg0: i32, %arg1: i32) -> (i32, i32) {
    %c0_i32 = arith.constant 0 : i32
    %c0_i32_0 = arith.constant 0 : i32
    %c0_i32_1 = arith.constant 0 : i32
    return %c0_i32, %c0_i32_0 : i32, i32
  }
  func.func @transform_16(%arg0: i32, %arg1: i32) -> (i32, i32) {
    %c0_i32 = arith.constant 0 : i32
    %c0_i32_0 = arith.constant 0 : i32
    %c0_i32_1 = arith.constant 0 : i32
    return %c0_i32, %c0_i32_0 : i32, i32
  }
  func.func @transform_17(%arg0: i32, %arg1: i32) -> (i32, i32, i32) {
    %c0_i32 = arith.constant 0 : i32
    %c0_i32_0 = arith.constant 0 : i32
    return %arg0, %arg1, %c0_i32 : i32, i32, i32
  }
}

</mosaic_0001>

<bundles_post_ra>
// kernel: tpu_custom_call.1
= control target key start
LH: loop header
LB: loop body
LE: loop exit
PB: predicated region body
PF: predicated region fallthrough
CT: control target
= control target key end

     0   :  { %s4619_s0 = inlined_call_operand.hbm [shape: f32[2,8,32], index: 0, kind: input, shape index: {}]   ;;  %s4620_s1 = inlined_call_operand.hbm [shape: bf16[32,32], index: 1, kind: input, shape index: {}]   ;;  %s4621_s2 = inlined_call_operand.hbm [shape: f32[1,32], index: 2, kind: input, shape index: {}]   ;;  %s4622_s3 = inlined_call_operand.hbm [shape: bf16[32,32], index: 3, kind: input, shape index: {}]   ;;  %s4623_s4 = inlined_call_operand.hbm [shape: f32[1,32], index: 4, kind: input, shape index: {}]   ;;  %s4624_s5 = inlined_call_operand.hbm [shape: bf16[32,32], index: 5, kind: input, shape index: {}]   ;;  %s4625_s6 = inlined_call_operand.hbm [shape: f32[1,32], index: 6, kind: input, shape index: {}]   ;;  %s4626_s7 = inlined_call_operand.hbm [shape: bf16[32,32], index: 7, kind: input, shape index: {}]   ;;  %s4627_s8 = inlined_call_operand.hbm [shape: f32[1,32], index: 8, kind: input, shape index: {}]   ;;  %s4628_s9 = inlined_call_operand.hbm [shape: f32[1,32], index: 9, kind: input, shape index: {}]   ;;  %s4629_s10 = inlined_call_operand.hbm [shape: f32[1,32], index: 10, kind: input, shape index: {}]   ;;  %s4630_s11 = inlined_call_operand.hbm [shape: bf16[32,128], index: 11, kind: input, shape index: {}]   ;;  %s4631_s12 = inlined_call_operand.hbm [shape: f32[1,128], index: 12, kind: input, shape index: {}]   ;;  %s4632_s13 = inlined_call_operand.hbm [shape: bf16[128,32], index: 13, kind: input, shape index: {}]   ;;  %s4633_s14 = inlined_call_operand.hbm [shape: f32[1,32], index: 14, kind: input, shape index: {}]   ;;  %s4634_s15 = inlined_call_operand.hbm [shape: f32[1,32], index: 15, kind: input, shape index: {}]   ;;  %s4635_s16 = inlined_call_operand.hbm [shape: f32[1,32], index: 16, kind: input, shape index: {}]   ;;  %s4636_s17 = inlined_call_operand.hbm [shape: f32[2,8,32], index: 17, kind: output, shape index: {}]  }
   0x1   :  { %4655 = sst [smem:[#allocation50_spill]] %s4619_s0 }
   0x2   :  { %4656 = sst [smem:[#allocation51_spill]] %s4620_s1 }
   0x3   :  { %4657 = sst [smem:[#allocation52_spill]] %s4621_s2 }
   0x4   :  { %4658 = sst [smem:[#allocation53_spill]] %s4622_s3 }
   0x5   :  { %4659 = sst [smem:[#allocation54_spill]] %s4623_s4 }
   0x6   :  { %4660 = sst [smem:[#allocation55_spill]] %s4624_s5 }
   0x7   :  { %4661 = sst [smem:[#allocation56_spill]] %s4635_s16 }
   0x8   :  { %4662 = sst [smem:[#allocation57_spill]] %s4636_s17 }
   0x9   :  { %22 = vsyncpa [#allocation5], 0 }
   0xa   :  { %24 = vsyncpa [#allocation5 + $0x1], 0 }
   0xb   :  { %25 = vsyncpa [#allocation8], 0 }
   0xc   :  { %26 = vsyncpa [#allocation11], 0 }
   0xd   :  { %27 = vsyncpa [#allocation14], 0 }
   0xe   :  { %28 = vsyncpa [#allocation17], 0 }
   0xf   :  { %29 = vsyncpa [#allocation20], 0 }
  0x10   :  { %30 = vsyncpa [#allocation23], 0 }
  0x11   :  { %31 = vsyncpa [#allocation26], 0 }
  0x12   :  { %32 = vsyncpa [#allocation29], 0 }
  0x13   :  { %33 = vsyncpa [#allocation6], 0 }
  0x14   :  { %35 = vsyncpa [#allocation6 + $0x1], 0  ;;  %s3842_s24 = smov 0   ;;  %s3844_s25 = smov 0  }
  0x15   :  { %s3846_s26 = smov 0   ;;  %s3848_s27 = smov 0  }
  0x16   :  { %s3850_s28 = smov 0   ;;  %s3852_s29 = smov 0  }
  0x17 LB: > { %4663 = sst [smem:[#allocation42_spill]] %s3700_s24  ;;  %s4639_s0 = sadd.s32 4294967295, %s3720_s29   ;;  %s3720_s29 = sphi %s3852_s29, %s41_s29   ;;  %s3716_s28 = sphi %s3850_s28, %s4714_s28   ;;  %s3712_s27 = sphi %s3848_s27, %s4713_s27   ;;  %s3708_s26 = sphi %s3846_s26, %s4712_s26   ;;  %s3704_s25 = sphi %s3844_s25, %s4709_s25   ;;  %s3700_s24 = sphi %s3842_s24, %s4708_s24  }
  0x18   : > { %4664 = sst [smem:[#allocation43_spill]] %s3704_s25  ;;  %p2613_p0 = scmp.ge.s32.totalorder %s3720_s29, 1 }
  0x19   : > { %4665 = sst [smem:[#allocation44_spill]] %s3708_s26  ;;  %p3876_p1 = scmp.eq.s32.totalorder %s4639_s0, 0 }
  0x1a   : > { %4666 = sst [smem:[#allocation45_spill]] %s3712_s27  ;;  %p448_p2 = scmp.lt.s32.totalorder %s3720_s29, 3 }
  0x1b   : > { %4667 = sst [smem:[#allocation46_spill]] %s3716_s28  ;;  %s3722_s19 = smov [#allocation7]  }
  0x1c   : > { %4668 = sst [smem:[#allocation47_spill]] %s3720_s29  ;;  %p3881_p3 = pnand %p2613_p0, %p448_p2 }
  0x1d   : > { %s4669_s30 = scalar_select %p3876_p1, 1, 0 }
  0x1e   : > { %s4671_s18 = scalar_select %p3881_p3, 1, 0 }
  0x1f   : > { %4670 = sst [smem:[#allocation48_spill]] %s4669_s30  ;;  %s460_s1 = sshll.u32 %s3722_s19, 4  ;;  %s3885_s1 = int_to_ptr.vmem [resolvable:$true] %s460_s1 }
  0x20   : > { %4672 = sst [smem:[#allocation49_spill]] %s4671_s18  ;;  %p2921_p4 = pneg %p3881_p3 }
  0x21   : > { %s3723_s21 = smov [#allocation10]   ;;  %s3724_s23 = smov [#allocation13]  }
  0x22   : > { %p3892_p6 = pnand %p2921_p4, %p3876_p1  ;;  %s484_s22 = sshll.u32 %s3723_s21, 4  ;;  %s3896_s22 = int_to_ptr.vmem [resolvable:$true] %s484_s22 }
  0x23   : > { %s3898_s0 = sshll.u32 %s3724_s23, 4  ;;  %s4674_s27 = sld [smem:[#allocation51_spill]]  ;;  %s509_s0 = int_to_ptr.vmem [resolvable:$true] %s3898_s0 }
  0x24   : > { %p3908_p8 = pneg %p3892_p6 }
  0x29   : > { %s4675_s16 = smov %s4674_s27  ;;  %s3128_s24 = scalar_lea.hbm %s4674_s27, 256 }
  0x2a   : > { %p3129_p7 = scmp.ne.s32.totalorder %s4675_s16, %s3128_s24  ;;  %p3135_p11 = scmp.lt.u32.totalorder %s3128_s24, %s4675_s16 }
  0x2c   : > { %p3131_p9 = pnand %p3908_p8, %p3129_p7 }
  0x2e   : > { %p3132_p10 = pneg %p3131_p9 }
  0x30   : > { %p3137_p12 = pnand %p3135_p11, %p3132_p10 }
  0x32   : > { %3140 = shalt.err (!%p3137_p12)
}
  0x33   : > { %s3141_s17 = scalar_lea.vmem %s3885_s1, 256  ;;  %p3149_p4 = scmp.lt.s32.totalorder %s3885_s1, %s3885_s1 }
  0x34   : > { %p3142_p13 = scmp.ne.s32.totalorder %s3885_s1, %s3141_s17  ;;  %p3150_p5 = scmp.lt.s32.totalorder %s3141_s17, %s3141_s17 }
  0x36   : > { %p3144_p0 = pnand %p3142_p13, %p3908_p8  ;;  %p3151_p7 = por %p3150_p5, %p3149_p4 }
  0x38   : > { %p3145_p2 = pneg %p3144_p0 }
  0x3a   : > { %p3152_p9 = pnand %p3151_p7, %p3145_p2 }
  0x3c   : > { %3155 = shalt.err (!%p3152_p9)
}
  0x3d   : > { %s3725_s25 = smov 64   ;;  %s3726_s24 = smov 4  }
  0x3e   : > { %2924 = dma.hbm_to_vmem [thread:$0]  (!%p3892_p6), %s4675_s16, 256, %s3885_s1, [#allocation8], %s3725_s25, %s3725_s25, %s3726_s24  }
  0x3f   : > { %s4677_s3 = sld [smem:[#allocation53_spill]] }
  0x45   : > { %s3156_s23 = scalar_lea.hbm %s4677_s3, 256 }
  0x46   : > { %p3157_p5 = scmp.ne.s32.totalorder %s4677_s3, %s3156_s23  ;;  %p3163_p12 = scmp.lt.u32.totalorder %s3156_s23, %s4677_s3 }
  0x48   : > { %p3159_p10 = pnand %p3157_p5, %p3908_p8 }
  0x4a   : > { %p3160_p11 = pneg %p3159_p10 }
  0x4c   : > { %p3165_p13 = pnand %p3163_p12, %p3160_p11 }
  0x4e   : > { %3168 = shalt.err (!%p3165_p13)
}
  0x4f   : > { %s3169_s1 = scalar_lea.vmem %s3896_s22, 256  ;;  %p3177_p7 = scmp.lt.s32.totalorder %s3896_s22, %s3896_s22 }
  0x50   : > { %p3170_p0 = scmp.ne.s32.totalorder %s3896_s22, %s3169_s1  ;;  %p3178_p9 = scmp.lt.s32.totalorder %s3169_s1, %s3169_s1 }
  0x52   : > { %p3172_p2 = pnand %p3170_p0, %p3908_p8  ;;  %p3179_p5 = por %p3178_p9, %p3177_p7 }
  0x54   : > { %p3173_p4 = pneg %p3172_p2 }
  0x56   : > { %p3180_p10 = pnand %p3179_p5, %p3173_p4 }
  0x58   : > { %3183 = shalt.err (!%p3180_p10)
}
  0x59   : > { %2930 = dma.hbm_to_vmem [thread:$0]  (!%p3892_p6), %s4677_s3, 256, %s3896_s22, [#allocation11], %s3725_s25, %s3725_s25, %s3726_s24  }
  0x5a   : > { %s4678_s5 = sld [smem:[#allocation55_spill]] }
  0x60   : > { %s3184_s18 = scalar_lea.hbm %s4678_s5, 256 }
  0x61   : > { %p3185_p11 = scmp.ne.s32.totalorder %s4678_s5, %s3184_s18  ;;  %p3191_p0 = scmp.lt.u32.totalorder %s3184_s18, %s4678_s5 }
  0x63   : > { %p3187_p12 = pnand %p3185_p11, %p3908_p8 }
  0x65   : > { %p3188_p13 = pneg %p3187_p12 }
  0x67   : > { %p3193_p2 = pnand %p3191_p0, %p3188_p13 }
  0x69   : > { %3196 = shalt.err (!%p3193_p2)
}
  0x6a   : > { %s3197_s1 = scalar_lea.vmem %s509_s0, 256  ;;  %p3205_p5 = scmp.lt.s32.totalorder %s509_s0, %s509_s0 }
  0x6b   : > { %p3198_p4 = scmp.ne.s32.totalorder %s509_s0, %s3197_s1  ;;  %p3206_p10 = scmp.lt.s32.totalorder %s3197_s1, %s3197_s1 }
  0x6d   : > { %p3200_p7 = pnand %p3198_p4, %p3908_p8  ;;  %p3207_p3 = por %p3206_p10, %p3205_p5 }
  0x6f   : > { %p3201_p9 = pneg %p3200_p7 }
  0x71   : > { %p3208_p1 = pnand %p3207_p3, %p3201_p9 }
  0x73   : > { %3211 = shalt.err (!%p3208_p1)
}
  0x74   : > { %2936 = dma.hbm_to_vmem [thread:$0]  (!%p3892_p6), %s4678_s5, 256, %s509_s0, [#allocation14], %s3725_s25, %s3725_s25, %s3726_s24  }
  0x75   : > { %s3727_s28 = smov [#allocation16]   ;;  %s3728_s27 = smov [#allocation19]  }
  0x76   : > { %s532_s29 = sshll.u32 %s3727_s28, 4  ;;  %s557_s18 = sshll.u32 %s3728_s27, 4  ;;  %s533_s29 = int_to_ptr.vmem [resolvable:$true] %s532_s29  ;;  %s558_s18 = int_to_ptr.vmem [resolvable:$true] %s557_s18 }
  0x77   : > { %s3212_s23 = scalar_lea.hbm %s4626_s7, 256 }
  0x78   : > { %p3213_p1 = scmp.ne.s32.totalorder %s4626_s7, %s3212_s23  ;;  %p3219_p12 = scmp.lt.u32.totalorder %s3212_s23, %s4626_s7 }
  0x7a   : > { %p3215_p3 = pnand %p3213_p1, %p3908_p8 }
  0x7c   : > { %p3216_p11 = pneg %p3215_p3 }
  0x7e   : > { %p3221_p13 = pnand %p3219_p12, %p3216_p11 }
  0x80   : > { %3224 = shalt.err (!%p3221_p13)
}
  0x81   : > { %s3225_s0 = scalar_lea.vmem %s533_s29, 256  ;;  %p3233_p7 = scmp.lt.s32.totalorder %s533_s29, %s533_s29 }
  0x82   : > { %p3226_p0 = scmp.ne.s32.totalorder %s533_s29, %s3225_s0  ;;  %p3234_p9 = scmp.lt.s32.totalorder %s3225_s0, %s3225_s0 }
  0x84   : > { %p3228_p2 = pnand %p3226_p0, %p3908_p8  ;;  %p3235_p5 = por %p3234_p9, %p3233_p7 }
  0x86   : > { %p3229_p4 = pneg %p3228_p2 }
  0x88   : > { %p3236_p10 = pnand %p3235_p5, %p3229_p4 }
  0x8a   : > { %3239 = shalt.err (!%p3236_p10)
}
  0x8b   : > { %2942 = dma.hbm_to_vmem [thread:$0]  (!%p3892_p6), %s4626_s7, 256, %s533_s29, [#allocation17], %s3725_s25, %s3725_s25, %s3726_s24  }
  0x8c   : > { %s3240_s19 = scalar_lea.hbm %s4628_s9, 16 }
  0x8d   : > { %p3241_p1 = scmp.ne.s32.totalorder %s4628_s9, %s3240_s19  ;;  %p3247_p12 = scmp.lt.u32.totalorder %s3240_s19, %s4628_s9 }
  0x8f   : > { %p3243_p3 = pnand %p3241_p1, %p3908_p8 }
  0x91   : > { %p3244_p11 = pneg %p3243_p3 }
  0x93   : > { %p3249_p13 = pnand %p3247_p12, %p3244_p11 }
  0x95   : > { %3252 = shalt.err (!%p3249_p13)
}
  0x96   : > { %s3253_s22 = scalar_lea.vmem %s558_s18, 16  ;;  %s3260_s29 = scalar_lea.vmem %s558_s18, 32 }
  0x97   : > { %p3254_p0 = scmp.ne.s32.totalorder %s558_s18, %s3253_s22  ;;  %p3261_p7 = scmp.lt.s32.totalorder %s558_s18, %s558_s18 }
  0x98   : > { %p3262_p9 = scmp.lt.s32.totalorder %s3260_s29, %s3253_s22 }
  0x99   : > { %p3256_p2 = pnand %p3254_p0, %p3908_p8 }
  0x9a   : > { %p3263_p5 = por %p3262_p9, %p3261_p7 }
  0x9b   : > { %p3257_p4 = pneg %p3256_p2 }
  0x9d   : > { %p3264_p10 = pnand %p3263_p5, %p3257_p4 }
  0x9f   : > { %3267 = shalt.err (!%p3264_p10)
}
  0xa0   : > { %2948 = dma.hbm_to_vmem [thread:$0]  (!%p3892_p6), %s4628_s9, 16, %s558_s18, [#allocation20]  }
  0xa1   : > { %s3729_s26 = smov [#allocation22]   ;;  %s3730_s27 = smov [#allocation25]  }
  0xa2   : > { %s578_s28 = sshll.u32 %s3729_s26, 4  ;;  %s602_s19 = sshll.u32 %s3730_s27, 4  ;;  %s579_s28 = int_to_ptr.vmem [resolvable:$true] %s578_s28  ;;  %s603_s19 = int_to_ptr.vmem [resolvable:$true] %s602_s19 }
  0xa3   : > { %s3268_s17 = scalar_lea.hbm %s4630_s11, 256 }
  0xa4   : > { %p3269_p1 = scmp.ne.s32.totalorder %s4630_s11, %s3268_s17  ;;  %p3275_p12 = scmp.lt.u32.totalorder %s3268_s17, %s4630_s11 }
  0xa6   : > { %p3271_p3 = pnand %p3269_p1, %p3908_p8 }
  0xa8   : > { %p3272_p11 = pneg %p3271_p3 }
  0xaa   : > { %p3277_p13 = pnand %p3275_p12, %p3272_p11 }
  0xac   : > { %3280 = shalt.err (!%p3277_p13)
}
  0xad   : > { %s3281_s18 = scalar_lea.vmem %s579_s28, 256  ;;  %p3289_p7 = scmp.lt.s32.totalorder %s579_s28, %s579_s28 }
  0xae   : > { %p3282_p0 = scmp.ne.s32.totalorder %s579_s28, %s3281_s18  ;;  %p3290_p9 = scmp.lt.s32.totalorder %s3281_s18, %s3281_s18 }
  0xb0   : > { %p3284_p2 = pnand %p3282_p0, %p3908_p8  ;;  %p3291_p5 = por %p3290_p9, %p3289_p7 }
  0xb2   : > { %p3285_p4 = pneg %p3284_p2 }
  0xb4   : > { %p3292_p10 = pnand %p3291_p5, %p3285_p4 }
  0xb6   : > { %3295 = shalt.err (!%p3292_p10)
}
  0xb7   : > { %2954 = dma.hbm_to_vmem [thread:$0]  (!%p3892_p6), %s4630_s11, 256, %s579_s28, [#allocation23], %s3725_s25, %s3725_s25, %s3726_s24  }
  0xb8   : > { %s3296_s23 = scalar_lea.hbm %s4632_s13, 1024 }
  0xb9   : > { %p3297_p1 = scmp.ne.s32.totalorder %s4632_s13, %s3296_s23  ;;  %p3303_p12 = scmp.lt.u32.totalorder %s3296_s23, %s4632_s13 }
  0xbb   : > { %p3299_p3 = pnand %p3297_p1, %p3908_p8 }
  0xbd   : > { %p3300_p11 = pneg %p3299_p3 }
  0xbf   : > { %p3305_p13 = pnand %p3303_p12, %p3300_p11 }
  0xc1   : > { %3308 = shalt.err (!%p3305_p13)
}
  0xc2   : > { %s3309_s0 = scalar_lea.vmem %s603_s19, 1024  ;;  %p3317_p7 = scmp.lt.s32.totalorder %s603_s19, %s603_s19 }
  0xc3   : > { %p3310_p0 = scmp.ne.s32.totalorder %s603_s19, %s3309_s0  ;;  %p3318_p9 = scmp.lt.s32.totalorder %s3309_s0, %s3309_s0 }
  0xc5   : > { %p3312_p2 = pnand %p3310_p0, %p3908_p8  ;;  %p3319_p5 = por %p3318_p9, %p3317_p7 }
  0xc7   : > { %p3313_p4 = pneg %p3312_p2 }
  0xc9   : > { %p3320_p10 = pnand %p3319_p5, %p3313_p4 }
  0xcb   : > { %3323 = shalt.err (!%p3320_p10)
}
  0xcc   : > { %2960 = dma.hbm_to_vmem [thread:$0]  (!%p3892_p6), %s4632_s13, 1024, %s603_s19, [#allocation26], %s3725_s25, %s3725_s25, %s3726_s24  }
  0xcd   : > { %s3731_s3 = smov [#allocation28]   ;;  %s3732_s27 = smov [#allocation9]  }
  0xce   : > { %s627_s26 = sshll.u32 %s3731_s3, 4  ;;  %s474_s21 = sshll.u32 %s3732_s27, 4  ;;  %s628_s26 = int_to_ptr.vmem [resolvable:$true] %s627_s26  ;;  %s475_s21 = int_to_ptr.vmem [resolvable:$true] %s474_s21 }
  0xcf   : > { %s3324_s1 = scalar_lea.hbm %s4634_s15, 16 }
  0xd0   : > { %p3325_p1 = scmp.ne.s32.totalorder %s4634_s15, %s3324_s1  ;;  %p3331_p12 = scmp.lt.u32.totalorder %s3324_s1, %s4634_s15 }
  0xd2   : > { %p3327_p3 = pnand %p3325_p1, %p3908_p8 }
  0xd4   : > { %p3328_p11 = pneg %p3327_p3 }
  0xd6   : > { %p3333_p13 = pnand %p3331_p12, %p3328_p11 }
  0xd8   : > { %3336 = shalt.err (!%p3333_p13)
}
  0xd9   : > { %s3337_s25 = scalar_lea.vmem %s628_s26, 16  ;;  %s3344_s24 = scalar_lea.vmem %s628_s26, 32 }
  0xda   : > { %p3338_p0 = scmp.ne.s32.totalorder %s628_s26, %s3337_s25  ;;  %p3345_p7 = scmp.lt.s32.totalorder %s628_s26, %s628_s26 }
  0xdb   : > { %p3346_p9 = scmp.lt.s32.totalorder %s3344_s24, %s3337_s25 }
  0xdc   : > { %p3340_p2 = pnand %p3338_p0, %p3908_p8 }
  0xdd   : > { %p3347_p5 = por %p3346_p9, %p3345_p7 }
  0xde   : > { %p3341_p4 = pneg %p3340_p2 }
  0xe0   : > { %p3348_p10 = pnand %p3347_p5, %p3341_p4 }
  0xe2   : > { %3351 = shalt.err (!%p3348_p10)
}
  0xe3   : > { %2966 = dma.hbm_to_vmem [thread:$0]  (!%p3892_p6), %s4634_s15, 16, %s628_s26, [#allocation29]  }
  0xe4   : > { %s4679_s2 = sld [smem:[#allocation52_spill]] }
  0xea   : > { %s3352_s23 = scalar_lea.hbm %s4679_s2, 16 }
  0xeb   : > { %p3353_p1 = scmp.ne.s32.totalorder %s4679_s2, %s3352_s23  ;;  %p3359_p12 = scmp.lt.u32.totalorder %s3352_s23, %s4679_s2 }
  0xed   : > { %p3355_p3 = pnand %p3353_p1, %p3908_p8 }
  0xef   : > { %p3356_p11 = pneg %p3355_p3 }
  0xf1   : > { %p3361_p13 = pnand %p3359_p12, %p3356_p11 }
  0xf3   : > { %3364 = shalt.err (!%p3361_p13)
}
  0xf4   : > { %s3365_s0 = scalar_lea.vmem %s475_s21, 16  ;;  %s3372_s26 = scalar_lea.vmem %s475_s21, 32 }
  0xf5   : > { %p3366_p0 = scmp.ne.s32.totalorder %s475_s21, %s3365_s0  ;;  %p3373_p7 = scmp.lt.s32.totalorder %s475_s21, %s475_s21 }
  0xf6   : > { %p3374_p9 = scmp.lt.s32.totalorder %s3372_s26, %s3365_s0 }
  0xf7   : > { %p3368_p2 = pnand %p3366_p0, %p3908_p8 }
  0xf8   : > { %p3375_p5 = por %p3374_p9, %p3373_p7 }
  0xf9   : > { %p3369_p4 = pneg %p3368_p2 }
  0xfb   : > { %p3376_p10 = pnand %p3375_p5, %p3369_p4 }
  0xfd   : > { %3379 = shalt.err (!%p3376_p10)
}
  0xfe   : > { %2927 = dma.hbm_to_vmem [thread:$0]  (!%p3892_p6), %s4679_s2, 16, %s475_s21, [#allocation8]  }
  0xff   : > { %s3733_s24 = smov [#allocation12]   ;;  %s3734_s18 = smov [#allocation15]  }
 0x100   : > { %s498_s19 = sshll.u32 %s3733_s24, 4  ;;  %s522_s3 = sshll.u32 %s3734_s18, 4  ;;  %s499_s19 = int_to_ptr.vmem [resolvable:$true] %s498_s19  ;;  %s523_s3 = int_to_ptr.vmem [resolvable:$true] %s522_s3 }
 0x101   : > { %s4680_s4 = sld [smem:[#allocation54_spill]] }
 0x107   : > { %s3380_s17 = scalar_lea.hbm %s4680_s4, 16 }
 0x108   : > { %p3381_p1 = scmp.ne.s32.totalorder %s4680_s4, %s3380_s17  ;;  %p3387_p12 = scmp.lt.u32.totalorder %s3380_s17, %s4680_s4 }
 0x10a   : > { %p3383_p3 = pnand %p3381_p1, %p3908_p8 }
 0x10c   : > { %p3384_p11 = pneg %p3383_p3 }
 0x10e   : > { %p3389_p13 = pnand %p3387_p12, %p3384_p11 }
 0x110   : > { %3392 = shalt.err (!%p3389_p13)
}
 0x111   : > { %s3393_s21 = scalar_lea.vmem %s499_s19, 16  ;;  %s3400_s26 = scalar_lea.vmem %s499_s19, 32 }
 0x112   : > { %p3394_p0 = scmp.ne.s32.totalorder %s499_s19, %s3393_s21  ;;  %p3401_p7 = scmp.lt.s32.totalorder %s499_s19, %s499_s19 }
 0x113   : > { %p3402_p9 = scmp.lt.s32.totalorder %s3400_s26, %s3393_s21 }
 0x114   : > { %p3396_p2 = pnand %p3394_p0, %p3908_p8 }
 0x115   : > { %p3403_p5 = por %p3402_p9, %p3401_p7 }
 0x116   : > { %p3397_p4 = pneg %p3396_p2 }
 0x118   : > { %p3404_p10 = pnand %p3403_p5, %p3397_p4 }
 0x11a   : > { %3407 = shalt.err (!%p3404_p10)
}
 0x11b   : > { %2933 = dma.hbm_to_vmem [thread:$0]  (!%p3892_p6), %s4680_s4, 16, %s499_s19, [#allocation11]  }
 0x11c   : > { %s3408_s27 = scalar_lea.hbm %s4625_s6, 16 }
 0x11d   : > { %p3409_p1 = scmp.ne.s32.totalorder %s4625_s6, %s3408_s27  ;;  %p3415_p12 = scmp.lt.u32.totalorder %s3408_s27, %s4625_s6 }
 0x11f   : > { %p3411_p3 = pnand %p3409_p1, %p3908_p8 }
 0x121   : > { %p3412_p11 = pneg %p3411_p3 }
 0x123   : > { %p3417_p13 = pnand %p3415_p12, %p3412_p11 }
 0x125   : > { %3420 = shalt.err (!%p3417_p13)
}
 0x126   : > { %s3421_s29 = scalar_lea.vmem %s523_s3, 16  ;;  %s3428_s19 = scalar_lea.vmem %s523_s3, 32 }
 0x127   : > { %p3422_p0 = scmp.ne.s32.totalorder %s523_s3, %s3421_s29  ;;  %p3429_p7 = scmp.lt.s32.totalorder %s523_s3, %s523_s3 }
 0x128   : > { %p3430_p9 = scmp.lt.s32.totalorder %s3428_s19, %s3421_s29 }
 0x129   : > { %p3424_p2 = pnand %p3422_p0, %p3908_p8 }
 0x12a   : > { %p3431_p5 = por %p3430_p9, %p3429_p7 }
 0x12b   : > { %p3425_p4 = pneg %p3424_p2 }
 0x12d   : > { %p3432_p10 = pnand %p3431_p5, %p3425_p4 }
 0x12f   : > { %3435 = shalt.err (!%p3432_p10)
}
 0x130   : > { %2939 = dma.hbm_to_vmem [thread:$0]  (!%p3892_p6), %s4625_s6, 16, %s523_s3, [#allocation14]  }
 0x131   : > { %s3735_s26 = smov [#allocation18]   ;;  %s3736_s25 = smov [#allocation21]  }
 0x132   : > { %s546_s28 = sshll.u32 %s3735_s26, 4  ;;  %s568_s24 = sshll.u32 %s3736_s25, 4  ;;  %s547_s28 = int_to_ptr.vmem [resolvable:$true] %s546_s28  ;;  %s569_s24 = int_to_ptr.vmem [resolvable:$true] %s568_s24 }
 0x133   : > { %s3436_s23 = scalar_lea.hbm %s4627_s8, 16 }
 0x134   : > { %p3437_p1 = scmp.ne.s32.totalorder %s4627_s8, %s3436_s23  ;;  %p3443_p12 = scmp.lt.u32.totalorder %s3436_s23, %s4627_s8 }
 0x136   : > { %p3439_p3 = pnand %p3437_p1, %p3908_p8 }
 0x138   : > { %p3440_p11 = pneg %p3439_p3 }
 0x13a   : > { %p3445_p13 = pnand %p3443_p12, %p3440_p11 }
 0x13c   : > { %3448 = shalt.err (!%p3445_p13)
}
 0x13d   : > { %s3449_s3 = scalar_lea.vmem %s547_s28, 16  ;;  %s3456_s19 = scalar_lea.vmem %s547_s28, 32 }
 0x13e   : > { %p3450_p0 = scmp.ne.s32.totalorder %s547_s28, %s3449_s3  ;;  %p3457_p7 = scmp.lt.s32.totalorder %s547_s28, %s547_s28 }
 0x13f   : > { %p3458_p9 = scmp.lt.s32.totalorder %s3456_s19, %s3449_s3 }
 0x140   : > { %p3452_p2 = pnand %p3450_p0, %p3908_p8 }
 0x141   : > { %p3459_p5 = por %p3458_p9, %p3457_p7 }
 0x142   : > { %p3453_p4 = pneg %p3452_p2 }
 0x144   : > { %p3460_p10 = pnand %p3459_p5, %p3453_p4 }
 0x146   : > { %3463 = shalt.err (!%p3460_p10)
}
 0x147   : > { %2945 = dma.hbm_to_vmem [thread:$0]  (!%p3892_p6), %s4627_s8, 16, %s547_s28, [#allocation17]  }
 0x148   : > { %s3464_s18 = scalar_lea.hbm %s4629_s10, 16 }
 0x149   : > { %p3465_p1 = scmp.ne.s32.totalorder %s4629_s10, %s3464_s18  ;;  %p3471_p12 = scmp.lt.u32.totalorder %s3464_s18, %s4629_s10 }
 0x14b   : > { %p3467_p3 = pnand %p3465_p1, %p3908_p8 }
 0x14d   : > { %p3468_p11 = pneg %p3467_p3 }
 0x14f   : > { %p3473_p13 = pnand %p3471_p12, %p3468_p11 }
 0x151   : > { %3476 = shalt.err (!%p3473_p13)
}
 0x152   : > { %s3477_s22 = scalar_lea.vmem %s569_s24, 16  ;;  %s3484_s28 = scalar_lea.vmem %s569_s24, 32 }
 0x153   : > { %p3478_p0 = scmp.ne.s32.totalorder %s569_s24, %s3477_s22  ;;  %p3485_p7 = scmp.lt.s32.totalorder %s569_s24, %s569_s24 }
 0x154   : > { %p3486_p9 = scmp.lt.s32.totalorder %s3484_s28, %s3477_s22 }
 0x155   : > { %p3480_p2 = pnand %p3478_p0, %p3908_p8 }
 0x156   : > { %p3487_p5 = por %p3486_p9, %p3485_p7 }
 0x157   : > { %p3481_p4 = pneg %p3480_p2 }
 0x159   : > { %p3488_p10 = pnand %p3487_p5, %p3481_p4 }
 0x15b   : > { %3491 = shalt.err (!%p3488_p10)
}
 0x15c   : > { %2951 = dma.hbm_to_vmem [thread:$0]  (!%p3892_p6), %s4629_s10, 16, %s569_s24, [#allocation20]  }
 0x15d   : > { %s3737_s19 = smov [#allocation24]   ;;  %s3738_s21 = smov [#allocation27]  }
 0x15e   : > { %s592_s0 = sshll.u32 %s3737_s19, 4  ;;  %s616_s26 = sshll.u32 %s3738_s21, 4  ;;  %s593_s0 = int_to_ptr.vmem [resolvable:$true] %s592_s0  ;;  %s617_s26 = int_to_ptr.vmem [resolvable:$true] %s616_s26 }
 0x15f   : > { %s3492_s27 = scalar_lea.hbm %s4631_s12, 16 }
 0x160   : > { %p3493_p1 = scmp.ne.s32.totalorder %s4631_s12, %s3492_s27  ;;  %p3499_p12 = scmp.lt.u32.totalorder %s3492_s27, %s4631_s12 }
 0x162   : > { %p3495_p3 = pnand %p3493_p1, %p3908_p8 }
 0x164   : > { %p3496_p11 = pneg %p3495_p3 }
 0x166   : > { %p3501_p13 = pnand %p3499_p12, %p3496_p11 }
 0x168   : > { %3504 = shalt.err (!%p3501_p13)
}
 0x169   : > { %s3505_s24 = scalar_lea.vmem %s593_s0, 16  ;;  %s3512_s28 = scalar_lea.vmem %s593_s0, 32 }
 0x16a   : > { %p3506_p0 = scmp.ne.s32.totalorder %s593_s0, %s3505_s24  ;;  %p3513_p7 = scmp.lt.s32.totalorder %s593_s0, %s593_s0 }
 0x16b   : > { %p3514_p9 = scmp.lt.s32.totalorder %s3512_s28, %s3505_s24 }
 0x16c   : > { %p3508_p2 = pnand %p3506_p0, %p3908_p8 }
 0x16d   : > { %p3515_p5 = por %p3514_p9, %p3513_p7 }
 0x16e   : > { %p3509_p4 = pneg %p3508_p2 }
 0x170   : > { %p3516_p10 = pnand %p3515_p5, %p3509_p4 }
 0x172   : > { %3519 = shalt.err (!%p3516_p10)
}
 0x173   : > { %2957 = dma.hbm_to_vmem [thread:$0]  (!%p3892_p6), %s4631_s12, 16, %s593_s0, [#allocation23]  }
 0x174   : > { %s3520_s25 = scalar_lea.hbm %s4633_s14, 16 }
 0x175   : > { %p3521_p1 = scmp.ne.s32.totalorder %s4633_s14, %s3520_s25  ;;  %p3527_p12 = scmp.lt.u32.totalorder %s3520_s25, %s4633_s14 }
 0x177   : > { %p3523_p3 = pnand %p3521_p1, %p3908_p8 }
 0x179   : > { %p3524_p11 = pneg %p3523_p3 }
 0x17b   : > { %p3529_p13 = pnand %p3527_p12, %p3524_p11 }
 0x17d   : > { %3532 = shalt.err (!%p3529_p13)
}
 0x17e   : > { %s3533_s1 = scalar_lea.vmem %s617_s26, 16  ;;  %s3540_s0 = scalar_lea.vmem %s617_s26, 32 }
 0x17f   : > { %p3534_p0 = scmp.ne.s32.totalorder %s617_s26, %s3533_s1  ;;  %p3541_p7 = scmp.lt.s32.totalorder %s617_s26, %s617_s26 }
 0x180   : > { %p3542_p9 = scmp.lt.s32.totalorder %s3540_s0, %s3533_s1 }
 0x181   : > { %p3536_p2 = pnand %p3534_p0, %p3908_p8 }
 0x182   : > { %p3543_p5 = por %p3542_p9, %p3541_p7 }
 0x183   : > { %p3537_p4 = pneg %p3536_p2 }
 0x185   : > { %p3544_p10 = pnand %p3543_p5, %p3537_p4 }
 0x187   : > { %3547 = shalt.err (!%p3544_p10)
}
 0x188   : > { %2963 = dma.hbm_to_vmem [thread:$0]  (!%p3892_p6), %s4633_s14, 16, %s617_s26, [#allocation26]  }
 0x189   : > { %s3739_s28 = smov [#allocation30]   ;;  %s4681_s21 = sld [smem:[#allocation56_spill]] }
 0x18a   : > { %s638_s29 = sshll.u32 %s3739_s28, 4  ;;  %s639_s29 = int_to_ptr.vmem [resolvable:$true] %s638_s29 }
 0x18f   : > { %s3548_s25 = scalar_lea.hbm %s4681_s21, 16 }
 0x190   : > { %p3549_p1 = scmp.ne.s32.totalorder %s4681_s21, %s3548_s25  ;;  %p3555_p12 = scmp.lt.u32.totalorder %s3548_s25, %s4681_s21 }
 0x192   : > { %p3551_p3 = pnand %p3549_p1, %p3908_p8 }
 0x194   : > { %p3552_p11 = pneg %p3551_p3 }
 0x196   : > { %p3557_p13 = pnand %p3555_p12, %p3552_p11 }
 0x198   : > { %3560 = shalt.err (!%p3557_p13)
}
 0x199   : > { %s3561_s26 = scalar_lea.vmem %s639_s29, 16  ;;  %s3568_s1 = scalar_lea.vmem %s639_s29, 32 }
 0x19a   : > { %p3562_p0 = scmp.ne.s32.totalorder %s639_s29, %s3561_s26  ;;  %p3569_p7 = scmp.lt.s32.totalorder %s639_s29, %s639_s29 }
 0x19b   : > { %p3570_p9 = scmp.lt.s32.totalorder %s3568_s1, %s3561_s26 }
 0x19c   : > { %p3564_p2 = pnand %p3562_p0, %p3908_p8 }
 0x19d   : > { %p3571_p5 = por %p3570_p9, %p3569_p7 }
 0x19e   : > { %p3565_p4 = pneg %p3564_p2 }
 0x1a0   : > { %p3572_p10 = pnand %p3571_p5, %p3565_p4 }
 0x1a2   : > { %3575 = shalt.err (!%p3572_p10)
}
 0x1a3   : > { %s4682_s24 = sld [smem:[#allocation47_spill]]  ;;  %s4683_s28 = sld [smem:[#allocation46_spill]] }
 0x1a4   : > { %s4684_s3 = sld [smem:[#allocation44_spill]]  ;;  %s4685_s19 = sld [smem:[#allocation43_spill]] }
 0x1a5   : > { %s4686_s30 = sld [smem:[#allocation42_spill]]  ;;  %s4687_s25 = sld [smem:[#allocation48_spill]] }
 0x1a6   : > { %2969 = dma.hbm_to_vmem [thread:$0]  (!%p3892_p6), %s4681_s21, 16, %s639_s29, [#allocation29]  }
 0x1a7   : > { %s4694_s2 = sld [smem:[#allocation50_spill]] }
 0x1a9   : > { %s2612_s18 = sadd.s32 4294967294, %s4682_s24   ;;  %s53_s27 = sadd.s32 1, %s4683_s28 }
 0x1aa   : > { %p55_p8 = scmp.ge.s32.totalorder %s53_s27, 2  ;;  %s60_s20 = sadd.s32 1, %s4684_s3 }
 0x1ab   : > { %p67_p1 = scmp.ne.s32.totalorder %s4684_s3, %s4685_s19  ;;  %p68_p3 = scmp.eq.s32.totalorder %s4682_s24, 0 }
 0x1ac   : > { %s4716_s27 = smov (%p55_p8, %s53_s27), 0  ;;  %p73_p12 = scmp.ne.s32.totalorder %s4685_s19, %s4686_s30 }
 0x1ad   : > { %p4231_p11 = por %p68_p3, %p67_p1  ;;  %s57_s29 = ssub.s32 %s4683_s28, %s4716_s27 }
 0x1ae   : > { %s4689_s17 = sadd.s32 4294967295, %s4682_s24   ;;  %p58_p13 = scmp.eq.s32.totalorder %s57_s29, 0 }
 0x1af   : > { %p435_p6 = scmp.eq.s32.totalorder %s4689_s17, 1  ;;  %p4690_p0 = scmp.ne.s32.totalorder %s4687_s25, 0 }
 0x1b0   : > { %p441_p7 = scmp.eq.s32.totalorder %s2612_s18, 1  ;;  %p2994_p5 = scmp.lt.s32.totalorder %s4682_s24, 2 }
 0x1b1   : > { %p4243_p2 = por %p4690_p0, %p73_p12  ;;  %p4247_p4 = por %p435_p6, %p67_p1 }
 0x1b2   : > { %s4252_s0 = scalar_select %p58_p13, %s4684_s3, %s60_s20  }
 0x1b3   : > { %s4692_s1 = scalar_select %p4247_p4, 1, 0 }
 0x1b4   : > { %p4254_p9 = por %p441_p7, %p73_p12  ;;  %s649_s19 = sand.u32 1, %s4684_s3  }
 0x1b5   : > { %s2632_s30 = sshll.u32 %s4683_s28, 7  ;;  %s2631_s29 = sshll.u32 %s649_s19, 3 }
 0x1b6   : > { %s4693_s22 = scalar_select %p4254_p9, 1, 0 }
 0x1b7   : > { %s4264_s4 = scalar_lea.hbm %s4694_s2, %s2632_s30  ;;  %s653_s18 = scalar_lea.vmem [#allocation4], %s2631_s29 }
 0x1b8   : > { %s660_s20 = sshll.u32 %s653_s18, 4  ;;  %p4268_p10 = pnand %p2994_p5, %p4231_p11  ;;  %s4272_s20 = int_to_ptr.vmem [resolvable:$true] %s660_s20 }
 0x1b9   : > { %s650_s24 = scalar_lea.sflag [#allocation5], %s649_s19  ;;  %s3576_s28 = scalar_lea.hbm %s4264_s4, 128 }
 0x1ba   : > { %p3577_p8 = scmp.ne.s32.totalorder %s4264_s4, %s3576_s28  ;;  %p3578_p1 = pneg %p4268_p10 }
 0x1bb   : > { %s3581_s23 = scalar_lea.hbm %s4694_s2, 256  ;;  %p3582_p11 = scmp.lt.u32.totalorder %s4264_s4, %s4694_s2 }
 0x1bc   : > { %p3579_p3 = pnand %p3578_p1, %p3577_p8  ;;  %p3583_p6 = scmp.lt.u32.totalorder %s3581_s23, %s3576_s28 }
 0x1bd   : > { %p3585_p0 = scmp.lt.u32.totalorder %s3576_s28, %s4264_s4 }
 0x1be   : > { %p3580_p12 = pneg %p3579_p3  ;;  %p3584_p13 = por %p3583_p6, %p3582_p11 }
 0x1c0   : > { %p3586_p7 = por %p3585_p0, %p3584_p13 }
 0x1c2   : > { %p3587_p5 = pnand %p3586_p7, %p3580_p12 }
 0x1c4   : > { %3590 = shalt.err (!%p3587_p5)
}
 0x1c5   : > { %s3591_s19 = scalar_lea.vmem %s4272_s20, 128  ;;  %s3740_s17 = smov [#allocation4]  }
 0x1c6   : > { %p3592_p8 = scmp.ne.s32.totalorder %s4272_s20, %s3591_s19  ;;  %s3596_s18 = sshll.u32 %s3740_s17, 4  ;;  %s3597_s18 = int_to_ptr.vmem [resolvable:$false] %s3596_s18 }
 0x1c7   : > { %s3598_s3 = scalar_lea.vmem %s3597_s18, 256  ;;  %p3599_p4 = scmp.lt.s32.totalorder %s4272_s20, %s3597_s18 }
 0x1c8   : > { %p3594_p3 = pnand %p3592_p8, %p3578_p1  ;;  %p3600_p11 = scmp.lt.s32.totalorder %s3598_s3, %s3591_s19 }
 0x1ca   : > { %p3595_p9 = pneg %p3594_p3  ;;  %p3601_p6 = por %p3600_p11, %p3599_p4 }
 0x1cc   : > { %p3602_p13 = pnand %p3601_p6, %p3595_p9 }
 0x1ce   : > { %3605 = shalt.err (!%p3602_p13)
}
 0x1cf   : > { %2973 = dma.hbm_to_vmem [thread:$0]  (!%p4268_p10), %s4264_s4, 128, %s4272_s20, %s650_s24  }
 0x1d0   : > { %s4696_s28 = sld [smem:[#allocation49_spill]] }
 0x1d6   : > { %p4697_p12 = scmp.ne.s32.totalorder %s4696_s28, 0 }
 0x1d7   : > { %s4698_s30 = sld [smem:[#allocation43_spill]] (!%p4697_p12) }
 0x1d8   : > { %669 = sbr.rel (%p4697_p12) target bundleno = 3086 (0xc0e), region = 88 }
 0x1dd   : > { %s4302_s23 = sand.u32 (!%p4697_p12), 1, %s4698_s30  }
 0x1de   : > { %s2634_s29 = sshll.u32 (!%p4697_p12), %s4302_s23, 3  ;;  %s672_s25 = scalar_lea.sflag (!%p4697_p12), [#allocation5], %s4302_s23 }
 0x1df   : > { %s675_s19 = scalar_lea.vmem [#allocation4], %s2634_s29 }
 0x1e0   : > { %3659 = dma.done.wait (%p4243_p2), %s672_s25, 128  }
 0x1e1   : > { %3661 = vsyncadd (%p4243_p2), %s672_s25, 4294967168  ;;  %s4699_s4 = sld [smem:[#allocation48_spill]] }
 0x1e7   : > { %p4700_p4 = scmp.ne.s32.totalorder %s4699_s4, 0 }
 0x1e9   : > { %3663 = dma.done.wait (%p4700_p4), [#allocation8], 272  }
 0x1ea   : > { %3665 = vsyncadd (%p4700_p4), [#allocation8], 4294967024 }
 0x1eb   : > { %3667 = dma.done.wait (%p4700_p4), [#allocation11], 272  }
 0x1ec   : > { %3669 = vsyncadd (%p4700_p4), [#allocation11], 4294967024 }
 0x1ed   : > { %3671 = dma.done.wait (%p4700_p4), [#allocation14], 272  }
 0x1ee   : > { %3673 = vsyncadd (%p4700_p4), [#allocation14], 4294967024 }
 0x1ef   : > { %3675 = dma.done.wait (%p4700_p4), [#allocation17], 272  }
 0x1f0   : > { %3677 = vsyncadd (%p4700_p4), [#allocation17], 4294967024 }
 0x1f1   : > { %3679 = dma.done.wait (%p4700_p4), [#allocation20], 32  }
 0x1f2   : > { %3681 = vsyncadd (%p4700_p4), [#allocation20], 4294967264 }
 0x1f3   : > { %3683 = dma.done.wait (%p4700_p4), [#allocation23], 272  }
 0x1f4   : > { %3685 = vsyncadd (%p4700_p4), [#allocation23], 4294967024 }
 0x1f5   : > { %3687 = dma.done.wait (%p4700_p4), [#allocation26], 1040  }
 0x1f6   : > { %3689 = vsyncadd (%p4700_p4), [#allocation26], 4294966256 }
 0x1f7   : > { %3691 = dma.done.wait (%p4700_p4), [#allocation29], 32  }
 0x1f8   : > { %3693 = vsyncadd (%p4700_p4), [#allocation29], 4294967264  ;;  %v3741_v0 = vmov 0.0   ;;  %vm3742_vm0 = vmmov 0   ;;  %v3088_v1 = vld [vmem:[#allocation10] sm:$0xff]   ;;  %v3089_v2 = vld [vmem:[#allocation10 + $0x8] sm:$0xff]   ;;  %v942_v28 = vlaneseq }
 0x1f9   : > { %2745 = vmatprep.subr.bf16.mxu0 %v3741_v0  ;;  %2749 = vmatprep.mubr.msk.bf16.mxu0 %vm3742_vm0, %v3741_v0  ;;  %v4350_v3 = vld [vmem:[%s675_s19] sm:$0xff]  ;;  %vm820_vm1 = vcmask 261120   ;;  %v3090_v5 = vld [vmem:[#allocation13] sm:$0xff]   ;;  %v2652_v9 = vld [vmem:[#allocation12] ss:$0 sm:$0xff]  ;;  %s3743_s5 = smov 120  }
 0x1fa   : > { %2769 = vmatprep.subr.bf16.mxu1 %v3741_v0  ;;  %2771 = vmatprep.mubr.msk.bf16.mxu1 %vm3742_vm0, %v3741_v0  ;;  %v796_v4 = vpack.c.bf16 %v4350_v3, %v4350_v3  ;;  %v3091_v6 = vld [vmem:[#allocation13 + $0x8] sm:$0xff]   ;;  %v3092_v7 = vld [vmem:[#allocation7] sm:$0xff]   ;;  %s3744_s26 = smov 104   ;;  %s3745_s20 = smov 112   ;;  %v3746_v26 = vmov 1983009808  }
 0x1fb   : > { %2746 = vmatpush3.bf16.msra.mxu0 %v3088_v1  ;;  %v3093_v8 = vld [vmem:[#allocation7 + $0x8] sm:$0xff]   ;;  %v2664_v19 = vld [vmem:[#allocation9] ss:$0 sm:$0xff]  ;;  %v940_v27 = vunpack.c.l.s4 %v3746_v26  ;;  %v3747_v29 = vmov 1934713408   ;;  %v4383_v32 = vshrl.u32 %v942_v28, 7 }
 0x1fc   : > { %2747 = vmatprep.subr.bf16.mxu0 %v3741_v0  ;;  %v972_v30 = vunpack.c.l.s4 %v3747_v29  ;;  %vm1077_vm2 = vcmask 60416   ;;  %vm1462_vm3 = vcmask 64512   ;;  %vm1715_vm5 = vcmask 1043456   ;;  %s3748_s24 = smov 16   ;;  %s3749_s17 = smov 8  }
 0x1fd   : > { %v941_v31 = vunpack.c.0.s8 %v940_v27  ;;  %s3750_s18 = smov 24   ;;  %vm2046_vm6 = vcmask 130048   ;;  %vm2048_vm7 = vcmask 195584   ;;  %s4701_s3 = sld [smem:[#allocation45_spill]] }
 0x1fe   : > { %v973_v35 = vunpack.c.0.s8 %v972_v30  ;;  %s789_s30 = scalar_lea.vmem [#allocation31], %s2634_s29  ;;  %p4703_p9 = scmp.ne.s32.totalorder %s4692_s1, 0 }
 0x1ff   : > { %2748 = vmatpush3.bf16.msra.mxu0 %v3089_v2  ;;  %v4386_v36 = vsub.s32 %v941_v31, %v4383_v32  ;;  %s2378_s25 = sshll.u32 %s789_s30, 4  ;;  %s3751_s29 = smov [#allocation31]   ;;  %s4571_s25 = int_to_ptr.vmem [resolvable:$true] %s2378_s25 }
 0x200   : > { %2753 = vmatprep.subr.bf16.mxu0 %v3741_v0  ;;  %v4389_v42 = vsub.s32 %v973_v35, %v4383_v32 }
 0x202   : > { %2750 = vmatmul.mubr.msk.bf16.vlgmr.msra.gmra.mrb[0].mxu0 %vm820_vm1, %v796_v4 }
 0x203   : > { %2754 = vmatpush3.bf16.msra.mxu0 %v3090_v5  ;;  %2757 = vmatprep.mubr.msk.bf16.mxu0 %vm3742_vm0, %v3741_v0  ;;  %s2702_s28 = sshll.u32 %s4701_s3, 7 }
 0x204   : > { %2755 = vmatprep.subr.bf16.mxu0 %v3741_v0 }
 0x207   : > { %2756 = vmatpush3.bf16.msra.mxu0 %v3091_v6 }
 0x208   : > { %2761 = vmatprep.subr.bf16.mxu0 %v3741_v0 }
 0x20a   : > { %2758 = vmatmul.mubr.msk.bf16.vlgmr.msra.gmra.mrb[4].mxu0 %vm820_vm1, %v796_v4 }
 0x20b   : > { %2762 = vmatpush3.bf16.msra.mxu0 %v3092_v7  ;;  %2765 = vmatprep.mubr.msk.bf16.mxu0 %vm3742_vm0, %v3741_v0 }
 0x20c   : > { %2763 = vmatprep.subr.bf16.mxu0 %v3741_v0 }
 0x20f   : > { %2764 = vmatpush3.bf16.msra.mxu0 %v3093_v8 }
 0x210   : > { %2775 = vmatprep.subr.bf16.mxu0 %v3741_v0 }
 0x212   : > { %2766 = vmatmul.mubr.msk.bf16.vlgmr.msra.gmra.mrb[8].mxu0 %vm820_vm1, %v796_v4 }
 0x213   : > { %2777 = vmatprep.mubr.msk.bf16.mxu0 %vm3742_vm0, %v3741_v0 }
 0x2d5   : > { %v858_v10 = vpop.f32.mrb[0].mxu0 }
 0x2d6   : > { %v859_v11 = vadd.f32 %v2652_v9, %v858_v10  ;;  %v2751_v12 = vpop.f32.mrb[1].mxu0 }
 0x2d7   : > { %v861_v13 = vpop.f32.mrb[2].mxu0 }
 0x2d8   : > { %928 = vrot.lane.b32.xlu0 %v859_v11, %s3743_s5  ;;  %v2752_v14 = vpop.f32.mrb[3].mxu0  ;;  %934 = vrot.lane.b32.xlu1 %v859_v11, %s3744_s26 }
 0x2dc   : > { %931 = vrot.lane.b32.xlu0 %v859_v11, %s3745_s20 }
 0x2dd   : > { %v4372_v15 = vpop.f32.mrb[4].mxu0 }
 0x2de   : > { %v2759_v16 = vpop.f32.mrb[5].mxu0 }
 0x2df   : > { %v924_v17 = vpop.f32.mrb[6].mxu0 }
 0x2e0   : > { %v2760_v18 = vpop.f32.mrb[7].mxu0 }
 0x2e5   : > { %v1301_v20 = vpop.f32.mrb[8].mxu0 }
 0x2e6   : > { %v1302_v21 = vadd.f32 %v2664_v19, %v1301_v20  ;;  %v2767_v22 = vpop.f32.mrb[9].mxu0 }
 0x2e7   : > { %v1304_v23 = vpop.f32.mrb[10].mxu0 }
 0x2e8   : > { %v4374_v24 = vmul.f32 0.35355338, %v1302_v21  ;;  %v2768_v25 = vpop.f32.mrb[11].mxu0 }
 0x2ea   : > { %1312 = vrot.lane.b32.xlu0 %v4374_v24, %s3745_s20  ;;  %1309 = vrot.lane.b32.xlu1 %v4374_v24, %s3743_s5 }
 0x2ee   : > { %1315 = vrot.lane.b32.xlu1 %v4374_v24, %s3744_s26 }
 0x34a   : > { %v929_v33 = vpop.permute.xlu0 %928  ;;  %v935_v34 = vpop.permute.xlu1 %934 }
 0x34b   : > { %v953_v37 = vcombine.low %v929_v33, %v935_v34  ;;  %v954_v38 = vcombine.high %v929_v33, %v935_v34 }
 0x34d   : > { %v961_v43 = vrot.slane %v953_v37, %v4386_v36  ;;  %v968_v44 = vrot.slane %v954_v38, %v4386_v36 }
 0x34e   : > { %v932_v39 = vpop.permute.xlu0 %931 }
 0x34f   : > { %v937_v40 = vcombine.low %v859_v11, %v932_v39  ;;  %v938_v41 = vcombine.high %v859_v11, %v932_v39 }
 0x351   : > { %v945_v45 = vrot.slane %v937_v40, %v4386_v36  ;;  %v952_v46 = vrot.slane %v938_v41, %v4386_v36 }
 0x353   : > { %v969_v47 = vcombine.low %v945_v45, %v961_v43  ;;  %v970_v48 = vcombine.high %v945_v45, %v961_v43  ;;  %v985_v49 = vcombine.low %v952_v46, %v968_v44  ;;  %v986_v50 = vcombine.high %v952_v46, %v968_v44 }
 0x355   : > { %v977_v51 = vrot.slane %v969_v47, %v4389_v42  ;;  %v984_v52 = vrot.slane %v970_v48, %v4389_v42  ;;  %v993_v53 = vrot.slane %v985_v49, %v4389_v42  ;;  %v1000_v54 = vrot.slane %v986_v50, %v4389_v42 }
 0x357   : > { %v1005_v55 = vcombine.low %v977_v51, %v984_v52  ;;  %v2660_v56 = vcombine.high %v977_v51, %v984_v52  ;;  %v1021_v57 = vcombine.low %v993_v53, %v1000_v54  ;;  %v2661_v58 = vcombine.high %v993_v53, %v1000_v54 }
 0x359   : > { %v1012_v59 = vrot.slane %v1005_v55, %v4386_v36  ;;  %v1020_v60 = vrot.slane %v2660_v56, %v4386_v36  ;;  %v1028_v61 = vrot.slane %v1021_v57, %v4386_v36  ;;  %v1036_v62 = vrot.slane %v2661_v58, %v4386_v36 }
 0x35b   : > { %v1037_v63 = vcombine.low %v1012_v59, %v1020_v60  ;;  %v1038_v1 = vcombine.high %v1012_v59, %v1020_v60  ;;  %v1053_v2 = vcombine.low %v1028_v61, %v1036_v62  ;;  %v1054_v4 = vcombine.high %v1028_v61, %v1036_v62 }
 0x35c   : > { %v1310_v5 = vpop.permute.xlu1 %1309  ;;  %v1313_v10 = vpop.permute.xlu0 %1312 }
 0x35d   : > { %v1045_v6 = vrot.slane %v1037_v63, %v4389_v42  ;;  %v1052_v7 = vrot.slane %v1038_v1, %v4389_v42  ;;  %v1061_v8 = vrot.slane %v1053_v2, %v4389_v42  ;;  %v1068_v9 = vrot.slane %v1054_v4, %v4389_v42 }
 0x35e   : > { %v1318_v16 = vcombine.low %v4374_v24, %v1313_v10  ;;  %v1319_v17 = vcombine.high %v4374_v24, %v1313_v10 }
 0x35f   : > { %v1069_v11 = vcombine.low %v1045_v6, %v1061_v8  ;;  %v1070_v12 = vcombine.high %v1045_v6, %v1061_v8  ;;  %v1071_v13 = vcombine.low %v1052_v7, %v1068_v9  ;;  %v1072_v14 = vcombine.high %v1052_v7, %v1068_v9 }
 0x360   : > { %v1316_v18 = vpop.permute.xlu1 %1315  ;;  %v1326_v26 = vrot.slane %v1318_v16, %v4386_v36  ;;  %v1333_v27 = vrot.slane %v1319_v17, %v4386_v36 }
 0x361   : > { %v1073_v19 = vpack.c.bf16 %v1069_v11, %v1069_v11  ;;  %v1074_v20 = vpack.c.bf16 %v1070_v12, %v1070_v12  ;;  %v1075_v21 = vpack.c.bf16 %v1071_v13, %v1071_v13  ;;  %v1076_v22 = vpack.c.bf16 %v1072_v14, %v1072_v14 }
 0x362   : > { %v1334_v23 = vcombine.low %v1310_v5, %v1316_v18  ;;  %v1335_v25 = vcombine.high %v1310_v5, %v1316_v18  ;;  %v1652_v11 = vand.u32 127, %v942_v28 }
 0x363   : > { %1078 = vst.msk [vmem:[#allocation2] sm:$0xf] %vm1077_vm2, %v1073_v19  ;;  %1079 = vst.msk [vmem:[#allocation2 + $0x4] sm:$0xf] %vm1077_vm2, %v1074_v20 }
 0x364   : > { %1080 = vst.msk [vmem:[#allocation2 + $0x8] sm:$0xf] %vm1077_vm2, %v1075_v21  ;;  %1081 = vst.msk [vmem:[#allocation2 + $0xc] sm:$0xf] %vm1077_vm2, %v1076_v22  ;;  %v1342_v24 = vrot.slane %v1334_v23, %v4386_v36  ;;  %v1349_v29 = vrot.slane %v1335_v25, %v4386_v36  ;;  %vm1653_vm4 = vcmp.le.s32.totalorder %v1652_v11, %v4383_v32 }
 0x366   : > { %v1350_v30 = vcombine.low %v1326_v26, %v1342_v24  ;;  %v1351_v31 = vcombine.high %v1326_v26, %v1342_v24  ;;  %v1366_v33 = vcombine.low %v1333_v27, %v1349_v29  ;;  %v1367_v34 = vcombine.high %v1333_v27, %v1349_v29 }
 0x368   : > { %v1358_v35 = vrot.slane %v1350_v30, %v4389_v42  ;;  %v1365_v37 = vrot.slane %v1351_v31, %v4389_v42  ;;  %v1374_v38 = vrot.slane %v1366_v33, %v4389_v42  ;;  %v1381_v39 = vrot.slane %v1367_v34, %v4389_v42 }
 0x36a   : > { %v1386_v40 = vcombine.low %v1358_v35, %v1365_v37  ;;  %v2668_v41 = vcombine.high %v1358_v35, %v1365_v37  ;;  %v1402_v43 = vcombine.low %v1374_v38, %v1381_v39  ;;  %v2669_v44 = vcombine.high %v1374_v38, %v1381_v39  ;;  %v1458_v45 = vld [vmem:[#allocation2] sm:$0xf]  ;;  %v1459_v46 = vld [vmem:[#allocation2 + $0x4] sm:$0xf] }
 0x36b   : > { %v1467_v47 = vsel %vm1462_vm3, %v1458_v45, 0  ;;  %v1513_v48 = vsel %vm1462_vm3, %v1459_v46, 0  ;;  %v1460_v61 = vld [vmem:[#allocation2 + $0x8] sm:$0xf]  ;;  %v1461_v62 = vld [vmem:[#allocation2 + $0xc] sm:$0xf] }
 0x36c   : > { %v1393_v49 = vrot.slane %v1386_v40, %v4386_v36  ;;  %v1401_v50 = vrot.slane %v2668_v41, %v4386_v36  ;;  %v1409_v51 = vrot.slane %v1402_v43, %v4386_v36  ;;  %v1417_v52 = vrot.slane %v2669_v44, %v4386_v36  ;;  %2770 = vmatpush3.bf16.xpose.msra.mxu1 %v1467_v47  ;;  %v2656_v39 = vld [vmem:[#allocation15] ss:$0 sm:$0xff] }
 0x36d   : > { %2776 = vmatpush3.bf16.xpose.msra.mxu0 %v1513_v48  ;;  %2781 = vmatprep.subr.bf16.mxu1 %v3741_v0  ;;  %v1559_v5 = vsel %vm1462_vm3, %v1460_v61, 0  ;;  %v1605_v6 = vsel %vm1462_vm3, %v1461_v62, 0  ;;  %v922_v40 = vadd.f32 %v2656_v39, %v4372_v15 }
 0x36e   : > { %2787 = vmatprep.subr.bf16.mxu0 %v3741_v0  ;;  %v1418_v53 = vcombine.low %v1393_v49, %v1401_v50  ;;  %v1434_v54 = vcombine.low %v1409_v51, %v1417_v52  ;;  %v1419_v55 = vcombine.high %v1393_v49, %v1401_v50  ;;  %v1435_v56 = vcombine.high %v1409_v51, %v1417_v52 }
 0x370   : > { %v1426_v57 = vrot.slane %v1418_v53, %v4389_v42  ;;  %v1442_v58 = vrot.slane %v1434_v54, %v4389_v42  ;;  %v1433_v2 = vrot.slane %v1419_v55, %v4389_v42  ;;  %v1449_v4 = vrot.slane %v1435_v56, %v4389_v42 }
 0x372   : > { %v1450_v59 = vcombine.low %v1426_v57, %v1442_v58  ;;  %v1451_v60 = vcombine.high %v1426_v57, %v1442_v58  ;;  %v1452_v7 = vcombine.low %v1433_v2, %v1449_v4  ;;  %v1453_v8 = vcombine.high %v1433_v2, %v1449_v4 }
 0x374   : > { %v1454_v63 = vpack.c.bf16 %v1450_v59, %v1450_v59  ;;  %v1455_v1 = vpack.c.bf16 %v1451_v60, %v1451_v60  ;;  %v1456_v9 = vpack.c.bf16 %v1452_v7, %v1452_v7  ;;  %v1457_v10 = vpack.c.bf16 %v1453_v8, %v1453_v8 }
 0x376   : > { %2772 = vmatmul.mubr.msk.bf16.vlgmr.msra.gmra.mrb[0].mxu1 %vm1462_vm3, %v1454_v63  ;;  %2778 = vmatmul.mubr.msk.bf16.vlgmr.msra.gmra.mrb[12].mxu0 %vm1462_vm3, %v1455_v1 }
 0x377   : > { %2782 = vmatpush3.bf16.xpose.msra.mxu1 %v1559_v5  ;;  %2788 = vmatpush3.bf16.xpose.msra.mxu0 %v1605_v6 }
 0x378   : > { %2783 = vmatprep.mubr.msk.bf16.mxu1 %vm3742_vm0, %v3741_v0  ;;  %2789 = vmatprep.mubr.msk.bf16.mxu0 %vm3742_vm0, %v3741_v0 }
 0x379   : > { %2793 = vmatprep.subr.bf16.mxu1 %v3741_v0  ;;  %2799 = vmatprep.subr.bf16.mxu0 %v3741_v0 }
 0x37e   : > { %2784 = vmatmul.mubr.msk.bf16.vlgmr.msra.gmra.mrb[4].mxu1 %vm1462_vm3, %v1456_v9  ;;  %2790 = vmatmul.mubr.msk.bf16.vlgmr.msra.gmra.mrb[16].mxu0 %vm1462_vm3, %v1457_v10 }
 0x37f   : > { %2795 = vmatprep.mubr.msk.bf16.mxu1 %vm3742_vm0, %v3741_v0  ;;  %2801 = vmatprep.mubr.msk.bf16.mxu0 %vm3742_vm0, %v3741_v0 }
 0x449   : > { %v1503_v12 = vpop.f32.mrb[0].mxu1  ;;  %v1549_v13 = vpop.f32.mrb[12].mxu0 }
 0x44a   : > { %v1656_v14 = vsel %vm1653_vm4, %v1503_v12, -1e+30  ;;  %v1657_v16 = vsel %vm1653_vm4, %v1549_v13, -1e+30  ;;  %v2773_v17 = vpop.f32.mrb[1].mxu1  ;;  %v2779_v18 = vpop.f32.mrb[13].mxu0 }
 0x44b   : > { %v1506_v19 = vpop.f32.mrb[2].mxu1  ;;  %v1552_v20 = vpop.f32.mrb[14].mxu0  ;;  %v1660_v21 = vsel %vm1462_vm3, %v1656_v14, -inf  ;;  %v1663_v22 = vsel %vm1462_vm3, %v1657_v16, -inf }
 0x44c   : > { %1661 = vmax.xlane.f32.xlu0 %v1660_v21  ;;  %v2774_v28 = vpop.f32.mrb[3].mxu1  ;;  %1664 = vmax.xlane.f32.xlu1 %v1663_v22  ;;  %v2780_v23 = vpop.f32.mrb[15].mxu0 }
 0x451   : > { %v1595_v25 = vpop.f32.mrb[4].mxu1  ;;  %v1641_v26 = vpop.f32.mrb[16].mxu0 }
 0x452   : > { %v1658_v27 = vsel %vm1653_vm4, %v1595_v25, -1e+30  ;;  %v2785_v24 = vpop.f32.mrb[5].mxu1  ;;  %v2791_v29 = vpop.f32.mrb[17].mxu0  ;;  %v1659_v34 = vsel %vm1653_vm4, %v1641_v26, -1e+30 }
 0x453   : > { %v1598_v30 = vpop.f32.mrb[6].mxu1  ;;  %v1644_v31 = vpop.f32.mrb[18].mxu0  ;;  %v1666_v33 = vsel %vm1462_vm3, %v1658_v27, -inf  ;;  %v1669_v38 = vsel %vm1462_vm3, %v1659_v34, -inf }
 0x454   : > { %1667 = vmax.xlane.f32.xlu0 %v1666_v33  ;;  %v2786_v35 = vpop.f32.mrb[7].mxu1  ;;  %v2792_v37 = vpop.f32.mrb[19].mxu0 }
 0x458   : > { %1670 = vmax.xlane.f32.xlu0 %v1669_v38 }
 0x45d   : > { %1083 = vrot.lane.b32.xlu1 %v922_v40, %s3743_s5  ;;  %s4702_s5 = sld [smem:[#allocation57_spill]] }
 0x461   : > { %1089 = vrot.lane.b32.xlu1 %v922_v40, %s3744_s26 }
 0x463   : > { %s4569_s26 = scalar_lea.hbm %s4702_s5, %s2702_s28 }
 0x46e   : > { %1086 = vrot.lane.b32.xlu0 %v922_v40, %s3745_s20  ;;  %s2364_s20 = scalar_lea.sflag [#allocation6], %s4302_s23 }
 0x4d9   : > { %v1662_v41 = vpop.xlane.xlu0 %1661  ;;  %v1665_v43 = vpop.xlane.xlu1 %1664 }
 0x4da   : > { %v1672_v44 = vsub.f32 %v1656_v14, %v1662_v41  ;;  %v1673_v32 = vsub.f32 %v1657_v16, %v1665_v43 }
 0x4dc   : > { %v1676_v45 = vmul.f32 1.442695, %v1672_v44  ;;  %v1678_v46 = vmul.f32 1.442695, %v1673_v32 }
 0x4dd   : > { %v1084_v47 = vpop.permute.xlu1 %1083 }
 0x4de   : > { %3106 = vpow2.f32 %v1676_v45 }
 0x4df   : > { %3108 = vpow2.f32 %v1678_v46 }
 0x4e1   : > { %v1668_v48 = vpop.xlane.xlu0 %1667  ;;  %v1090_v51 = vpop.permute.xlu1 %1089 }
 0x4e2   : > { %v1674_v49 = vsub.f32 %v1658_v27, %v1668_v48  ;;  %v1108_v54 = vcombine.low %v1084_v47, %v1090_v51  ;;  %v1109_v55 = vcombine.high %v1084_v47, %v1090_v51 }
 0x4e4   : > { %v1680_v50 = vmul.f32 1.442695, %v1674_v49  ;;  %v1116_v63 = vrot.slane %v1108_v54, %v4386_v36  ;;  %v1123_v1 = vrot.slane %v1109_v55, %v4386_v36 }
 0x4e5   : > { %v1671_v15 = vpop.xlane.xlu0 %1670 }
 0x4e6   : > { %3110 = vpow2.f32 %v1680_v50  ;;  %v1675_v52 = vsub.f32 %v1659_v34, %v1671_v15 }
 0x4e8   : > { %v4467_v53 = vpop.eup %3106  ;;  %v1682_v56 = vmul.f32 1.442695, %v1675_v52 }
 0x4e9   : > { %v4469_v57 = vpop.eup %3108  ;;  %v1087_v58 = vpop.permute.xlu0 %1086  ;;  %v1684_v59 = vsel %vm1462_vm3, %v4467_v53, 0.0 }
 0x4ea   : > { %3112 = vpow2.f32 %v1682_v56  ;;  %v1092_v60 = vcombine.low %v922_v40, %v1087_v58  ;;  %v1093_v61 = vcombine.high %v922_v40, %v1087_v58  ;;  %1685 = vadd.xlane.f32.xlu1 %v1684_v59  ;;  %v1687_v62 = vsel %vm1462_vm3, %v4469_v57, 0.0 }
 0x4eb   : > { %1688 = vadd.xlane.f32.xlu0 %v1687_v62 }
 0x4ec   : > { %v1100_v2 = vrot.slane %v1092_v60, %v4386_v36  ;;  %v1107_v4 = vrot.slane %v1093_v61, %v4386_v36 }
 0x4ee   : > { %v1124_v5 = vcombine.low %v1100_v2, %v1116_v63  ;;  %v1125_v6 = vcombine.high %v1100_v2, %v1116_v63  ;;  %v1140_v7 = vcombine.low %v1107_v4, %v1123_v1  ;;  %v1141_v8 = vcombine.high %v1107_v4, %v1123_v1 }
 0x4f0   : > { %v4479_v9 = vpop.eup %3110  ;;  %v1132_v10 = vrot.slane %v1124_v5, %v4389_v42  ;;  %v1139_v11 = vrot.slane %v1125_v6, %v4389_v42  ;;  %v1148_v12 = vrot.slane %v1140_v7, %v4389_v42  ;;  %v1155_v13 = vrot.slane %v1141_v8, %v4389_v42 }
 0x4f1   : > { %v1690_v14 = vsel %vm1462_vm3, %v4479_v9, 0.0 }
 0x4f2   : > { %v1160_v16 = vcombine.low %v1132_v10, %v1139_v11  ;;  %v2662_v17 = vcombine.high %v1132_v10, %v1139_v11  ;;  %v1176_v18 = vcombine.low %v1148_v12, %v1155_v13  ;;  %v2663_v19 = vcombine.high %v1148_v12, %v1155_v13  ;;  %1691 = vadd.xlane.f32.xlu0 %v1690_v14 }
 0x4f4   : > { %v4487_v20 = vpop.eup %3112  ;;  %v1167_v21 = vrot.slane %v1160_v16, %v4386_v36  ;;  %v1175_v22 = vrot.slane %v2662_v17, %v4386_v36  ;;  %v1183_v28 = vrot.slane %v1176_v18, %v4386_v36  ;;  %v1191_v23 = vrot.slane %v2663_v19, %v4386_v36 }
 0x4f5   : > { %v1693_v25 = vsel %vm1462_vm3, %v4487_v20, 0.0 }
 0x4f6   : > { %v1192_v26 = vcombine.low %v1167_v21, %v1175_v22  ;;  %v1193_v27 = vcombine.high %v1167_v21, %v1175_v22  ;;  %v1208_v24 = vcombine.low %v1183_v28, %v1191_v23  ;;  %v1209_v29 = vcombine.high %v1183_v28, %v1191_v23  ;;  %1694 = vadd.xlane.f32.xlu1 %v1693_v25 }
 0x4f8   : > { %v1200_v30 = vrot.slane %v1192_v26, %v4389_v42  ;;  %v1207_v31 = vrot.slane %v1193_v27, %v4389_v42  ;;  %v1216_v33 = vrot.slane %v1208_v24, %v4389_v42  ;;  %v1223_v34 = vrot.slane %v1209_v29, %v4389_v42 }
 0x4fa   : > { %v1224_v35 = vcombine.low %v1200_v30, %v1216_v33  ;;  %v1225_v37 = vcombine.high %v1200_v30, %v1216_v33  ;;  %v1226_v38 = vcombine.low %v1207_v31, %v1223_v34  ;;  %v1227_v39 = vcombine.high %v1207_v31, %v1223_v34 }
 0x4fc   : > { %v1228_v40 = vpack.c.bf16 %v1224_v35, %v1224_v35  ;;  %v1229_v41 = vpack.c.bf16 %v1225_v37, %v1225_v37  ;;  %v1230_v43 = vpack.c.bf16 %v1226_v38, %v1226_v38  ;;  %v1231_v44 = vpack.c.bf16 %v1227_v39, %v1227_v39  ;;  %v3094_v35 = vld [vmem:[#allocation16] sm:$0xff]  }
 0x4fe   : > { %1232 = vst.msk [vmem:[#allocation3] sm:$0xf] %vm1077_vm2, %v1228_v40  ;;  %1233 = vst.msk [vmem:[#allocation3 + $0x4] sm:$0xf] %vm1077_vm2, %v1229_v41 }
 0x4ff   : > { %1234 = vst.msk [vmem:[#allocation3 + $0x8] sm:$0xf] %vm1077_vm2, %v1230_v43  ;;  %1235 = vst.msk [vmem:[#allocation3 + $0xc] sm:$0xf] %vm1077_vm2, %v1231_v44 }
 0x505   : > { %v1708_v32 = vld [vmem:[#allocation3] sm:$0xf]  ;;  %v1709_v45 = vld [vmem:[#allocation3 + $0x4] sm:$0xf] }
 0x506   : > { %v1717_v46 = vsel %vm1715_vm5, %v1708_v32, 0  ;;  %v1763_v47 = vsel %vm1715_vm5, %v1709_v45, 0  ;;  %v1710_v56 = vld [vmem:[#allocation3 + $0x8] sm:$0xf]  ;;  %v1711_v59 = vld [vmem:[#allocation3 + $0xc] sm:$0xf] }
 0x507   : > { %2794 = vmatpush3.bf16.msra.mxu1 %v1717_v46  ;;  %2800 = vmatpush3.bf16.msra.mxu0 %v1763_v47  ;;  %v1809_v61 = vsel %vm1715_vm5, %v1710_v56, 0  ;;  %v1855_v62 = vsel %vm1715_vm5, %v1711_v59, 0  ;;  %v3095_v45 = vld [vmem:[#allocation16 + $0x8] sm:$0xff]  }
 0x508   : > { %2805 = vmatprep.subr.bf16.mxu1 %v3741_v0  ;;  %2811 = vmatprep.subr.bf16.mxu0 %v3741_v0 }
 0x577   : > { %v1686_v48 = vpop.xlane.xlu1 %1685 }
 0x578   : > { %3114 = vrcp.f32 %v1686_v48  ;;  %v1689_v49 = vpop.xlane.xlu0 %1688 }
 0x579   : > { %3116 = vrcp.f32 %v1689_v49 }
 0x57f   : > { %v1692_v50 = vpop.xlane.xlu0 %1691 }
 0x580   : > { %3118 = vrcp.f32 %v1692_v50 }
 0x582   : > { %v3115_v51 = vpop.eup %3114 }
 0x583   : > { %v3117_v15 = vpop.eup %3116  ;;  %v1700_v52 = vmul.f32 %v3115_v51, %v4467_v53  ;;  %v1695_v54 = vpop.xlane.xlu1 %1694 }
 0x584   : > { %v1701_v55 = vmul.f32 %v3117_v15, %v4469_v57  ;;  %3120 = vrcp.f32 %v1695_v54 }
 0x585   : > { %v1704_v58 = vpack.c.bf16 %v1700_v52, %v1700_v52 }
 0x586   : > { %v1705_v60 = vpack.c.bf16 %v1701_v55, %v1701_v55 }
 0x587   : > { %2796 = vmatmul.mubr.msk.bf16.vlgmr.msra.gmra.mrb[8].mxu1 %vm1462_vm3, %v1704_v58 }
 0x588   : > { %2802 = vmatmul.mubr.msk.bf16.vlgmr.msra.gmra.mrb[20].mxu0 %vm1462_vm3, %v1705_v60  ;;  %2806 = vmatpush3.bf16.msra.mxu1 %v1809_v61 }
 0x589   : > { %2812 = vmatpush3.bf16.msra.mxu0 %v1855_v62  ;;  %2807 = vmatprep.mubr.msk.bf16.mxu1 %vm3742_vm0, %v3741_v0 }
 0x58a   : > { %v3119_v53 = vpop.eup %3118  ;;  %2813 = vmatprep.mubr.msk.bf16.mxu0 %vm3742_vm0, %v3741_v0  ;;  %2817 = vmatprep.subr.bf16.mxu1 %v3741_v0 }
 0x58b   : > { %v1702_v57 = vmul.f32 %v3119_v53, %v4479_v9  ;;  %2825 = vmatprep.subr.bf16.mxu0 %v3741_v0 }
 0x58d   : > { %v1706_v63 = vpack.c.bf16 %v1702_v57, %v1702_v57 }
 0x58e   : > { %v3121_v1 = vpop.eup %3120 }
 0x58f   : > { %v1703_v2 = vmul.f32 %v3121_v1, %v4487_v20  ;;  %2808 = vmatmul.mubr.msk.bf16.vlgmr.msra.gmra.mrb[12].mxu1 %vm1462_vm3, %v1706_v63 }
 0x590   : > { %2821 = vmatprep.mubr.msk.bf16.mxu1 %vm3742_vm0, %v3741_v0  ;;  %2818 = vmatpush3.bf16.msra.mxu1 %v3094_v35  ;;  %v3103_v35 = vld [vmem:[#allocation25 + $0x28] sm:$0xff]  }
 0x591   : > { %v1707_v4 = vpack.c.bf16 %v1703_v2, %v1703_v2  ;;  %2819 = vmatprep.subr.bf16.mxu1 %v3741_v0 }
 0x593   : > { %2814 = vmatmul.mubr.msk.bf16.vlgmr.msra.gmra.mrb[24].mxu0 %vm1462_vm3, %v1707_v4  ;;  %v2680_v4 = vld [vmem:[#allocation18] ss:$0 sm:$0xff] }
 0x594   : > { %2829 = vmatprep.mubr.msk.bf16.mxu0 %vm3742_vm0, %v3741_v0  ;;  %2820 = vmatpush3.bf16.msra.mxu1 %v3095_v45 }
 0x595   : > { %2833 = vmatprep.subr.bf16.mxu1 %v3741_v0 }
 0x65a   : > { %v1753_v5 = vpop.f32.mrb[8].mxu1 }
 0x65b   : > { %v1799_v6 = vpop.f32.mrb[20].mxu0  ;;  %v2797_v7 = vpop.f32.mrb[9].mxu1 }
 0x65c   : > { %v2803_v8 = vpop.f32.mrb[21].mxu0  ;;  %v1756_v9 = vpop.f32.mrb[10].mxu1 }
 0x65d   : > { %v1802_v10 = vpop.f32.mrb[22].mxu0  ;;  %v2798_v11 = vpop.f32.mrb[11].mxu1 }
 0x65e   : > { %v2804_v12 = vpop.f32.mrb[23].mxu0 }
 0x662   : > { %v1845_v13 = vpop.f32.mrb[12].mxu1 }
 0x663   : > { %v1897_v14 = vcombine.low %v1753_v5, %v1845_v13  ;;  %v1898_v16 = vcombine.high %v1753_v5, %v1845_v13  ;;  %v2809_v17 = vpop.f32.mrb[13].mxu1 }
 0x664   : > { %v1848_v18 = vpop.f32.mrb[14].mxu1 }
 0x665   : > { %v2810_v19 = vpop.f32.mrb[15].mxu1  ;;  %v1905_v25 = vrot.slane %v1897_v14, %v4386_v36  ;;  %v1912_v26 = vrot.slane %v1898_v16, %v4386_v36  ;;  %v3096_v18 = vld [vmem:[#allocation22] sm:$0xff]  }
 0x666   : > { %v1891_v20 = vpop.f32.mrb[24].mxu0  ;;  %2826 = vmatpush3.bf16.msra.mxu0 %v3096_v18  ;;  %v3097_v19 = vld [vmem:[#allocation22 + $0x8] sm:$0xff]  }
 0x667   : > { %v1913_v21 = vcombine.low %v1799_v6, %v1891_v20  ;;  %v1914_v22 = vcombine.high %v1799_v6, %v1891_v20  ;;  %v2815_v28 = vpop.f32.mrb[25].mxu0  ;;  %2827 = vmatprep.subr.bf16.mxu0 %v3741_v0  ;;  %v3098_v20 = vld [vmem:[#allocation25] sm:$0xff]  }
 0x668   : > { %v1894_v23 = vpop.f32.mrb[26].mxu0 }
 0x669   : > { %v1921_v27 = vrot.slane %v1913_v21, %v4386_v36  ;;  %v1928_v24 = vrot.slane %v1914_v22, %v4386_v36  ;;  %v2816_v29 = vpop.f32.mrb[27].mxu0  ;;  %v3099_v21 = vld [vmem:[#allocation25 + $0x8] sm:$0xff]  }
 0x66a   : > { %2828 = vmatpush3.bf16.msra.mxu0 %v3097_v19 }
 0x66b   : > { %v1929_v30 = vcombine.low %v1905_v25, %v1921_v27  ;;  %v1930_v31 = vcombine.high %v1905_v25, %v1921_v27  ;;  %v1945_v33 = vcombine.low %v1912_v26, %v1928_v24  ;;  %v1946_v34 = vcombine.high %v1912_v26, %v1928_v24  ;;  %v2684_v26 = vld [vmem:[#allocation19] ss:$0 sm:$0xff]  ;;  %v2685_v24 = vld [vmem:[#allocation21] ss:$0 sm:$0xff] }
 0x66d   : > { %v1937_v37 = vrot.slane %v1929_v30, %v4389_v42  ;;  %v1944_v38 = vrot.slane %v1930_v31, %v4389_v42  ;;  %v1953_v39 = vrot.slane %v1945_v33, %v4389_v42  ;;  %v1960_v40 = vrot.slane %v1946_v34, %v4389_v42  ;;  %v3101_v33 = vld [vmem:[#allocation25 + $0x18] sm:$0xff]   ;;  %v3102_v34 = vld [vmem:[#allocation25 + $0x20] sm:$0xff]  }
 0x66f   : > { %v1965_v41 = vcombine.low %v1937_v37, %v1944_v38  ;;  %v2678_v43 = vcombine.high %v1937_v37, %v1944_v38  ;;  %v1981_v44 = vcombine.low %v1953_v39, %v1960_v40  ;;  %v2679_v32 = vcombine.high %v1953_v39, %v1960_v40  ;;  %v3104_v37 = vld [vmem:[#allocation25 + $0x30] sm:$0xff]   ;;  %v3105_v38 = vld [vmem:[#allocation25 + $0x38] sm:$0xff]  }
 0x670   : > { %v2686_v39 = vld [vmem:[#allocation24] ss:$0 sm:$0xff] }
 0x671   : > { %v1972_v46 = vrot.slane %v1965_v41, %v4386_v36  ;;  %v1980_v47 = vrot.slane %v2678_v43, %v4386_v36  ;;  %v1988_v48 = vrot.slane %v1981_v44, %v4386_v36  ;;  %v1996_v49 = vrot.slane %v2679_v32, %v4386_v36 }
 0x673   : > { %v1998_v50 = vcombine.high %v1972_v46, %v1980_v47  ;;  %v2014_v51 = vcombine.high %v1988_v48, %v1996_v49  ;;  %v1997_v15 = vcombine.low %v1972_v46, %v1980_v47  ;;  %v2013_v52 = vcombine.low %v1988_v48, %v1996_v49 }
 0x675   : > { %v2012_v54 = vrot.slane %v1998_v50, %v4389_v42  ;;  %v2028_v55 = vrot.slane %v2014_v51, %v4389_v42  ;;  %v2005_v56 = vrot.slane %v1997_v15, %v4389_v42  ;;  %v2021_v58 = vrot.slane %v2013_v52, %v4389_v42  ;;  %v2690_v51 = vld [vmem:[#allocation27] ss:$0 sm:$0xff] }
 0x677   : > { %v2031_v59 = vcombine.low %v2012_v54, %v2028_v55  ;;  %v2030_v60 = vcombine.high %v2005_v56, %v2021_v58  ;;  %v2032_v61 = vcombine.high %v2012_v54, %v2028_v55  ;;  %v2029_v62 = vcombine.low %v2005_v56, %v2021_v58 }
 0x679   : > { %2038 = vrot.lane.b32.xlu1 %v2031_v59, %s3748_s24  ;;  %2034 = vrot.lane.b32.xlu0 %v2030_v60, %s3749_s17  ;;  %s3606_s24 = scalar_lea.vmem %s4571_s25, 128  ;;  %s3610_s17 = sshll.u32 %s3751_s29, 4  ;;  %s3611_s17 = int_to_ptr.vmem [resolvable:$false] %s3610_s17 }
 0x67a   : > { %p3607_p2 = scmp.ne.s32.totalorder %s4571_s25, %s3606_s24  ;;  %p3613_p0 = scmp.lt.s32.totalorder %s4571_s25, %s3611_s17 }
 0x67c   : > { %p3608_p10 = pnand %p3607_p2, %p4703_p9 }
 0x67d   : > { %2042 = vrot.lane.b32.xlu1 %v2032_v61, %s3750_s18  ;;  %s3612_s18 = scalar_lea.vmem %s3611_s17, 256 }
 0x67e   : > { %p3609_p1 = pneg %p3608_p10  ;;  %p3614_p7 = scmp.lt.s32.totalorder %s3612_s18, %s3606_s24 }
 0x680   : > { %p3615_p5 = por %p3614_p7, %p3613_p0 }
 0x682   : > { %p3616_p8 = pnand %p3615_p5, %p3609_p1 }
 0x6eb   : > { %v2039_v36 = vpop.permute.xlu1 %2038  ;;  %v2035_v53 = vpop.permute.xlu0 %2034 }
 0x6ec   : > { %v2045_v57 = vsel %vm1462_vm3, %v2029_v62, %v2035_v53 }
 0x6ed   : > { %v2047_v1 = vsel %vm2046_vm6, %v2045_v57, %v2039_v36 }
 0x6ef   : > { %v2043_v63 = vpop.permute.xlu1 %2042 }
 0x6f0   : > { %v2049_v2 = vsel %vm2048_vm7, %v2047_v1, %v2043_v63 }
 0x6f1   : > { %v2050_v42 = vpack.c.bf16 %v2049_v2, %v2049_v2  ;;  %v2699_v2 = vld [vmem:[#allocation28] ss:$0 sm:$0xff] }
 0x6f3   : > { %2822 = vmatmul.mubr.msk.bf16.vlgmr.msra.gmra.mrb[16].mxu1 %vm820_vm1, %v2050_v42 }
 0x6f4   : > { %2849 = vmatprep.mubr.msk.bf16.mxu1 %vm3742_vm0, %v3741_v0  ;;  %2834 = vmatpush3.bf16.msra.mxu1 %v3098_v20 }
 0x6f5   : > { %2835 = vmatprep.subr.bf16.mxu1 %v3741_v0 }
 0x6f8   : > { %2836 = vmatpush3.bf16.msra.mxu1 %v3099_v21 }
 0x6f9   : > { %2837 = vmatprep.subr.bf16.mxu1 %v3741_v0 }
 0x7c6   : > { %v2111_v5 = vpop.f32.mrb[16].mxu1 }
 0x7c7   : > { %v2112_v6 = vadd.f32 %v2680_v4, %v2111_v5  ;;  %v2823_v7 = vpop.f32.mrb[17].mxu1  ;;  %v2700_v4 = vld [vmem:[#allocation30] ss:$0 sm:$0xff] }
 0x7c8   : > { %v2114_v8 = vpop.f32.mrb[18].mxu1 }
 0x7c9   : > { %v2824_v9 = vpop.f32.mrb[19].mxu1  ;;  %v2117_v10 = vadd.f32 %v2112_v6, %v4350_v3  ;;  %v3100_v3 = vld [vmem:[#allocation25 + $0x10] sm:$0xff]  }
 0x7ca   : > { %2838 = vmatpush3.bf16.msra.mxu1 %v3100_v3 }
 0x7cb   : > { %v2120_v11 = vsel %vm820_vm1, %v2117_v10, 0.0  ;;  %2839 = vmatprep.subr.bf16.mxu1 %v3741_v0 }
 0x7cc   : > { %2121 = vadd.xlane.f32.xlu0 %v2120_v11 }
 0x7ce   : > { %2840 = vmatpush3.bf16.msra.mxu1 %v3101_v33 }
 0x7cf   : > { %2841 = vmatprep.subr.bf16.mxu1 %v3741_v0 }
 0x7d2   : > { %2842 = vmatpush3.bf16.msra.mxu1 %v3102_v34 }
 0x7d3   : > { %2843 = vmatprep.subr.bf16.mxu1 %v3741_v0 }
 0x7d6   : > { %2844 = vmatpush3.bf16.msra.mxu1 %v3103_v35 }
 0x7d7   : > { %2845 = vmatprep.subr.bf16.mxu1 %v3741_v0 }
 0x7da   : > { %2846 = vmatpush3.bf16.msra.mxu1 %v3104_v37 }
 0x7db   : > { %2847 = vmatprep.subr.bf16.mxu1 %v3741_v0 }
 0x7de   : > { %2848 = vmatpush3.bf16.msra.mxu1 %v3105_v38 }
 0x859   : > { %v2122_v12 = vpop.xlane.xlu0 %2121 }
 0x85a   : > { %v2124_v13 = vmul.f32 0.03125, %v2122_v12 }
 0x85c   : > { %v2125_v14 = vsub.f32 %v2117_v10, %v2124_v13 }
 0x85e   : > { %v2126_v16 = vmul.f32 %v2125_v14, %v2125_v14 }
 0x860   : > { %v2127_v17 = vsel %vm820_vm1, %v2126_v16, 0.0 }
 0x861   : > { %2128 = vadd.xlane.f32.xlu1 %v2127_v17 }
 0x8ee   : > { %v2129_v22 = vpop.xlane.xlu1 %2128 }
 0x8ef   : > { %v2130_v28 = vmul.f32 0.03125, %v2129_v22 }
 0x8f1   : > { %v2131_v23 = vadd.f32 1e-05, %v2130_v28 }
 0x8f3   : > { %3122 = vrsqrt.f32 %v2131_v23 }
 0x8fd   : > { %v3123_v25 = vpop.eup %3122 }
 0x8fe   : > { %v2133_v27 = vmul.f32 %v3123_v25, %v2125_v14 }
 0x900   : > { %v2140_v29 = vmul.f32 %v2684_v26, %v2133_v27 }
 0x902   : > { %v2147_v30 = vadd.f32 %v2685_v24, %v2140_v29 }
 0x904   : > { %v2148_v31 = vpack.c.bf16 %v2147_v30, %v2147_v30 }
 0x906   : > { %2830 = vmatmul.mubr.msk.bf16.vlgmr.msra.gmra.mrb[28].mxu0 %vm820_vm1, %v2148_v31 }
 0x9d9   : > { %v2209_v40 = vpop.f32.mrb[28].mxu0 }
 0x9da   : > { %v2210_v41 = vadd.f32 %v2686_v39, %v2209_v40  ;;  %v2831_v43 = vpop.f32.mrb[29].mxu0 }
 0x9db   : > { %v2212_v44 = vpop.f32.mrb[30].mxu0 }
 0x9dc   : > { %v2216_v32 = vmul.f32 0.70710677, %v2210_v41  ;;  %v2832_v45 = vpop.f32.mrb[31].mxu0  ;;  %v2215_v47 = vmul.f32 0.5, %v2210_v41 }
 0x9de   : > { %3124 = verf.f32 %v2216_v32 }
 0x9e8   : > { %v3125_v46 = vpop.eup %3124 }
 0x9e9   : > { %v2218_v48 = vadd.f32 1.0, %v3125_v46 }
 0x9eb   : > { %v2219_v49 = vmul.f32 %v2218_v48, %v2215_v47 }
 0x9ed   : > { %v2220_v50 = vpack.c.bf16 %v2219_v49, %v2219_v49 }
 0x9ef   : > { %2850 = vmatmul.mubr.bf16.vlgmr.msra.gmra.mrb[20].mxu1 %v2220_v50 }
 0xac2   : > { %v2326_v15 = vpop.f32.mrb[20].mxu1 }
 0xac3   : > { %v2327_v52 = vadd.f32 %v2690_v51, %v2326_v15  ;;  %v2851_v0 = vpop.f32.mrb[21].mxu1 }
 0xac4   : > { %v2329_v54 = vpop.f32.mrb[22].mxu1 }
 0xac5   : > { %v2852_v55 = vpop.f32.mrb[23].mxu1  ;;  %v2332_v56 = vadd.f32 %v2327_v52, %v2147_v30 }
 0xac7   : > { %v2335_v58 = vsel %vm820_vm1, %v2332_v56, 0.0 }
 0xac8   : > { %2336 = vadd.xlane.f32.xlu0 %v2335_v58 }
 0xb55   : > { %v2337_v59 = vpop.xlane.xlu0 %2336 }
 0xb56   : > { %v2338_v60 = vmul.f32 0.03125, %v2337_v59 }
 0xb58   : > { %v2339_v61 = vsub.f32 %v2332_v56, %v2338_v60 }
 0xb5a   : > { %v2340_v62 = vmul.f32 %v2339_v61, %v2339_v61 }
 0xb5c   : > { %v2341_v36 = vsel %vm820_vm1, %v2340_v62, 0.0 }
 0xb5d   : > { %2342 = vadd.xlane.f32.xlu0 %v2341_v36 }
 0xbea   : > { %v2343_v53 = vpop.xlane.xlu0 %2342 }
 0xbeb   : > { %v2344_v57 = vmul.f32 0.03125, %v2343_v53 }
 0xbed   : > { %v2345_v63 = vadd.f32 1e-05, %v2344_v57 }
 0xbef   : > { %3126 = vrsqrt.f32 %v2345_v63 }
 0xbf9   : > { %v3127_v1 = vpop.eup %3126 }
 0xbfa   : > { %v2347_v42 = vmul.f32 %v3127_v1, %v2339_v61 }
 0xbfc   : > { %v2354_v5 = vmul.f32 %v2699_v2, %v2347_v42 }
 0xbfe   : > { %v2361_v6 = vadd.f32 %v2700_v4, %v2354_v5 }
 0xc00   : > { %2362 = vst.msk [vmem:[%s789_s30] sm:$0xff] %vm820_vm1, %v2361_v6 }
 0xc01   : > { %3619 = shalt.err (!%p3616_p8)
}
 0xc02   : > { %s3620_s23 = scalar_lea.hbm %s4569_s26, 128  ;;  %s3624_s30 = scalar_lea.hbm %s4702_s5, 256 }
 0xc03   : > { %p3621_p3 = scmp.ne.s32.totalorder %s4569_s26, %s3620_s23  ;;  %p3625_p13 = scmp.lt.u32.totalorder %s4569_s26, %s4702_s5 }
 0xc04   : > { %p3626_p12 = scmp.lt.u32.totalorder %s3624_s30, %s3620_s23  ;;  %p3628_p2 = scmp.lt.u32.totalorder %s3620_s23, %s4569_s26 }
 0xc05   : > { %p3622_p11 = pnand %p3621_p3, %p4703_p9 }
 0xc06   : > { %p3627_p4 = por %p3626_p12, %p3625_p13 }
 0xc07   : > { %p3623_p6 = pneg %p3622_p11 }
 0xc08   : > { %p3629_p10 = por %p3628_p2, %p3627_p4 }
 0xc0a   : > { %p3630_p1 = pnand %p3629_p10, %p3623_p6 }
 0xc0c   : > { %3633 = shalt.err (!%p3630_p1)
}
 0xc0d   : > { %2919 = dma.vmem_to_hbm [thread:$0]  (%p4703_p9), %s4571_s25, 128, %s4569_s26, %s2364_s20  }
 0xc0e PF: > { %s4704_s24 = sld [smem:[#allocation42_spill]]  ;;  %s4705_s29 = sld [smem:[#allocation47_spill]] }
 0xc0f   : > { %p4706_p0 = scmp.ne.s32.totalorder %s4693_s22, 0 }
 0xc14   : > { %s2390_s17 = sand.u32 1, %s4704_s24   ;;  %p4707_p7 = scmp.ge.s32.totalorder %s4705_s29, 2 }
 0xc15   : > { %s2391_s18 = scalar_lea.sflag [#allocation6], %s2390_s17 }
 0xc16   : > { %p2975_p5 = pnand %p4707_p7, %p4706_p0 }
 0xc18   : > { %3695 = dma.done.wait (!%p2975_p5), %s2391_s18, 128  }
 0xc19   : > { %3697 = vsyncadd (!%p2975_p5), %s2391_s18, 4294967168  ;;  %s41_s29 = sadd.s32 1, %s4705_s29   ;;  %s4708_s24 = sld [smem:[#allocation43_spill]] }
 0xc1a   : > { %p38_p8 = scmp.ge.s32.totalorder %s41_s29, 4   ;;  %s4709_s25 = sld [smem:[#allocation44_spill]] }
 0xc1b   : > { %s4710_s1 = sld [smem:[#allocation46_spill]]  ;;  %s4711_s23 = smov %s4716_s27 }
 0xc1c   : > { %s4712_s26 = smov %s4252_s0  ;;  %s4714_s28 = smov %s4711_s23 }
 0xc1d   :  { %40 = sbr.rel (!%p38_p8) target bundleno = 23 (0x17), region = 202 }
 0xc21   : > { %s4713_s27 = smov %s4710_s1 }
 0xc24   :  { %2396 = vsyncpa [#allocation5], 1 }
 0xc25   :  { %2398 = vsyncpa [#allocation5 + $0x1], 1 }
 0xc26   :  { %2399 = vsyncpa [#allocation8], 1 }
 0xc27   :  { %2400 = vsyncpa [#allocation11], 1 }
 0xc28   :  { %2401 = vsyncpa [#allocation14], 1 }
 0xc29   :  { %2402 = vsyncpa [#allocation17], 1 }
 0xc2a   :  { %2403 = vsyncpa [#allocation20], 1 }
 0xc2b   :  { %2404 = vsyncpa [#allocation23], 1 }
 0xc2c   :  { %2405 = vsyncpa [#allocation26], 1 }
 0xc2d   :  { %2406 = vsyncpa [#allocation29], 1 }
 0xc2e   :  { %2407 = vsyncpa [#allocation6], 1 }
 0xc2f   :  { %2409 = vsyncpa [#allocation6 + $0x1], 1 }

</bundles_post_ra>
